<compile_context>
chip_gen: v7x
topology: tpu7x:2x2x1
jax: 0.10.0
libtpu: 0.0.40
codegen_flags: <defaults>
</compile_context>

<pallas_src>
import math
import numpy as np

import jax
import jax.numpy as jnp
from jax.experimental import pallas as pl
from jax.experimental.pallas import tpu as pltpu

# ----------------------------- config (small) --------------------------------
BATCH = 2
SEQ = 8
INPUT_SIZE = 16
HIDDEN = 32
NUM_LAYERS = 2


# ----------------------------- fused kernel ----------------------------------
def _make_fused_kernel(T, B, H):
    H2 = 2 * H          # per-time-step output width [fwd | rev]
    G = 4 * H2          # fused gate width [i_f i_r | f_f f_r | o_f o_r | g_f g_r]

    def kernel(x_ref,
               w1_ref, whh1_ref, b1_ref,
               w2_ref, whh2_ref, b2_ref,
               watt_ref, proj_ref,
               feat_ref):

        def run_layer(x_bf16, w_cat, whh, b):
            # x_bf16: (T*B, Din) bf16 value, time-major rows (row = t*B + b).
            # ONE fused input projection for both directions: (T*B, 2G) f32.
            xg = jnp.dot(x_bf16, w_cat, preferred_element_type=jnp.float32)
            # Hoisted per-step gate inputs: fwd(t) + rev(T-1-t) + bias.
            xg_steps = [xg[t * B:(t + 1) * B, 0:G]
                        + xg[(T - 1 - t) * B:(T - t) * B, G:2 * G]
                        + b
                        for t in range(T)]

            h = jnp.zeros((B, H2), jnp.float32)    # [h_fwd | h_rev]
            c = jnp.zeros((B, H2), jnp.float32)    # [c_fwd | c_rev]
            h_steps = []
            for t in range(T):                     # static T -> fully unrolled
                gates = xg_steps[t] + jnp.dot(h.astype(jnp.bfloat16), whh,
                                              preferred_element_type=jnp.float32)
                # sigmoid only on [i|f|o] lanes, tanh only on the [g] lanes
                sig = jax.nn.sigmoid(gates[:, 0:3 * H2])
                g = jnp.tanh(gates[:, 3 * H2:4 * H2])
                i = sig[:, 0:H2]
                f = sig[:, H2:2 * H2]
                o = sig[:, 2 * H2:3 * H2]
                c = f * c + i * g
                h = o * jnp.tanh(c)
                h_steps.append(h)
            # forward half of step t belongs to time t, reverse half to T-1-t
            return [jnp.concatenate([h_steps[t][:, 0:H],
                                     h_steps[T - 1 - t][:, H:H2]], axis=1)
                    for t in range(T)]             # list of (B, H2), time order

        lo1_steps = run_layer(x_ref[...], w1_ref[...], whh1_ref[...], b1_ref[...])
        lo1_flat = jnp.concatenate(lo1_steps, axis=0).astype(jnp.bfloat16)
        lo2_steps = run_layer(lo1_flat, w2_ref[...], whh2_ref[...], b2_ref[...])
        lo2_flat = jnp.concatenate(lo2_steps, axis=0)                  # (T*B, H2) f32

        # ----- attention pooling (flat layout, no (T,B,H2) relayout) -----
        u = jnp.tanh(jnp.dot(lo2_flat.astype(jnp.bfloat16), watt_ref[...],
                             preferred_element_type=jnp.float32))      # (T*B, H2)
        logits = jnp.sum(u * proj_ref[...], axis=-1, keepdims=True)    # (T*B, 1)
        att = jnp.concatenate([logits[t * B:(t + 1) * B, :] for t in range(T)],
                              axis=1)                                   # (B, T)
        att = att - jnp.max(att, axis=1, keepdims=True)                 # stable softmax
        e = jnp.exp(att)
        score = e * pl.reciprocal(jnp.sum(e, axis=1, keepdims=True),
                                  approx=True)                          # (B, T)
        feat = jnp.zeros((B, H2), jnp.float32)
        for t in range(T):
            feat = feat + lo2_steps[t] * score[:, t:t + 1]
        feat_ref[...] = feat

    return kernel


def bilstm_atte_forward(x, fp):
    """x: (B, T, input_size). fp: fused params from prepare_fused_params."""
    B, T, Din = x.shape
    H2 = fp["l1_whh"].shape[0]
    H = H2 // 2
    # Only XLA-side layout op: tiny transpose+flatten of the raw input to
    # time-major rows (row = t*B + b), cast to bf16 for the MXU.
    x_flat = jnp.transpose(x, (1, 0, 2)).reshape(T * B, Din).astype(jnp.bfloat16)

    vmem = pl.BlockSpec(memory_space=pltpu.MemorySpace.VMEM)
    kernel = _make_fused_kernel(T, B, H)
    return pl.pallas_call(
        kernel,
        out_shape=jax.ShapeDtypeStruct((B, H2), jnp.float32),
        in_specs=[vmem] * 9,
        out_specs=vmem,
    )(x_flat,
      fp["l1_w"], fp["l1_whh"], fp["l1_b"],
      fp["l2_w"], fp["l2_whh"], fp["l2_b"],
      fp["att_w"], fp["att_proj"])


# ----------------------------- weight fusion (host-side prep) ----------------
def prepare_fused_params(params, hidden_size):
    """Pack per-direction LSTM weights into the fused interleaved-gate layout.

    Fused gate slot order is [i | f | o | g] (tanh gate last), each slot H2
    wide holding [fwd | rev] halves.  Matmul weights are pre-cast to bf16.
    """
    H = hidden_size
    H2 = 2 * H
    G = 4 * H2
    SLOT = (0, 1, 3, 2)   # PyTorch gate order [i,f,g,o] -> fused slot [i,f,o,g]

    def widen_cols(w, off):
        out = jnp.zeros((w.shape[0], G), jnp.float32)
        for k in range(4):
            p = SLOT[k]
            out = out.at[:, p * H2 + off:p * H2 + off + H].set(w[:, k * H:(k + 1) * H])
        return out

    fused = {}
    for layer_idx, layer_params in enumerate(params["lstm"], start=1):
        (wih_f, whh_f, b_f), (wih_r, whh_r, b_r) = layer_params
        # Both directions' input projections fused along N: (Din, 2G).
        fused[f"l{layer_idx}_w"] = jnp.concatenate(
            [widen_cols(wih_f, 0), widen_cols(wih_r, H)], axis=1).astype(jnp.bfloat16)
        # Block-diagonal recurrent weight: (2H, G).
        fused[f"l{layer_idx}_whh"] = jnp.concatenate(
            [widen_cols(whh_f, 0), widen_cols(whh_r, H)], axis=0).astype(jnp.bfloat16)
        # Bias stays f32 (added in f32 after the matmul).
        fused[f"l{layer_idx}_b"] = widen_cols(b_f, 0) + widen_cols(b_r, H)   # (1, G)
    fused["att_w"] = params["weight_W"].astype(jnp.bfloat16)                 # (2H, 2H)
    fused["att_proj"] = params["weight_proj"].reshape(1, H2)                 # (1, 2H) f32
    return fused


# ----------------------------- pure-JAX reference -----------------------------
def _lstm_layer_ref(x_btd, w_ih, w_hh, b, H):
    def step(carry, x_t):
        h, c = carry
        gates = x_t @ w_ih + h @ w_hh + b
        i = jax.nn.sigmoid(gates[:, 0:H])
        f = jax.nn.sigmoid(gates[:, H:2 * H])
        g = jnp.tanh(gates[:, 2 * H:3 * H])
        o = jax.nn.sigmoid(gates[:, 3 * H:4 * H])
        c = f * c + i * g
        h = o * jnp.tanh(c)
        return (h, c), h
    B = x_btd.shape[0]
    init = (jnp.zeros((B, H), jnp.float32), jnp.zeros((B, H), jnp.float32))
    _, hs = jax.lax.scan(step, init, jnp.swapaxes(x_btd, 0, 1))
    return jnp.swapaxes(hs, 0, 1)


def bilstm_atte_reference(x, params):
    inp = x
    H = HIDDEN
    for layer_params in params["lstm"]:
        dir_outs = []
        for direction, (w_ih, w_hh, b) in enumerate(layer_params):
            xi = inp if direction == 0 else jnp.flip(inp, axis=1)
            h_seq = _lstm_layer_ref(xi, w_ih, w_hh, b, H)
            if direction == 1:
                h_seq = jnp.flip(h_seq, axis=1)
            dir_outs.append(h_seq)
        inp = jnp.concatenate(dir_outs, axis=-1)
    u = jnp.tanh(inp @ params["weight_W"])
    att = u @ params["weight_proj"]                             # (B, T, 1)
    att_score = jax.nn.softmax(att, axis=1)
    return jnp.sum(inp * att_score, axis=1)


# ----------------------------- deterministic params ---------------------------
def init_params(key, input_size, hidden_size, num_layers):
    k_std = 1.0 / math.sqrt(hidden_size)
    params = {"lstm": []}
    for layer in range(num_layers):
        in_dim = input_size if layer == 0 else 2 * hidden_size
        layer_params = []
        for _ in range(2):  # forward / reverse directions
            key, k1, k2, k3, k4 = jax.random.split(key, 5)
            # PyTorch stores (4H, in) / (4H, H); we keep the transposed layout,
            # gate order [i, f, g, o] along the 4H axis.
            w_ih = jax.random.uniform(k1, (in_dim, 4 * hidden_size),
                                      minval=-k_std, maxval=k_std, dtype=jnp.float32)
            w_hh = jax.random.uniform(k2, (hidden_size, 4 * hidden_size),
                                      minval=-k_std, maxval=k_std, dtype=jnp.float32)
            b_ih = jax.random.uniform(k3, (4 * hidden_size,),
                                      minval=-k_std, maxval=k_std, dtype=jnp.float32)
            b_hh = jax.random.uniform(k4, (4 * hidden_size,),
                                      minval=-k_std, maxval=k_std, dtype=jnp.float32)
            layer_params.append((w_ih, w_hh, (b_ih + b_hh).reshape(1, -1)))
        params["lstm"].append(layer_params)

    d2 = 2 * hidden_size
    key, kw, kp = jax.random.split(key, 3)
    bound_w = math.sqrt(6.0 / (d2 + d2))          # xavier_uniform
    bound_p = math.sqrt(6.0 / (d2 + 1))
    params["weight_W"] = jax.random.uniform(kw, (d2, d2), minval=-bound_w,
                                            maxval=bound_w, dtype=jnp.float32)
    params["weight_proj"] = jax.random.uniform(kp, (d2, 1), minval=-bound_p,
                                               maxval=bound_p, dtype=jnp.float32)
    return params


# ----------------------------- main -------------------------------------------
if __name__ == "__main__":
    key = jax.random.PRNGKey(0)
    key, kx = jax.random.split(key)
    x = jax.random.normal(kx, (BATCH, SEQ, INPUT_SIZE), dtype=jnp.float32)

    params = init_params(key, INPUT_SIZE, HIDDEN, NUM_LAYERS)
    fused = prepare_fused_params(params, HIDDEN)

    feat = jax.jit(bilstm_atte_forward)(x, fused)
    feat = jax.block_until_ready(feat)

    ref = jax.block_until_ready(bilstm_atte_reference(x, params))
    np.testing.assert_allclose(np.asarray(feat), np.asarray(ref),
                               rtol=2e-2, atol=2e-2)

    assert feat.shape == (BATCH, 2 * HIDDEN)
    print("KERNEL_OK")
</pallas_src>

<mosaic_0001>
module attributes {stable_mosaic.version = 11 : i64} {
  func.func @kernel(%arg0: memref<16x16xbf16, #tpu.memory_space<vmem>>, %arg1: memref<16x512xbf16, #tpu.memory_space<vmem>>, %arg2: memref<64x256xbf16, #tpu.memory_space<vmem>>, %arg3: memref<1x256xf32, #tpu.memory_space<vmem>>, %arg4: memref<64x512xbf16, #tpu.memory_space<vmem>>, %arg5: memref<64x256xbf16, #tpu.memory_space<vmem>>, %arg6: memref<1x256xf32, #tpu.memory_space<vmem>>, %arg7: memref<64x64xbf16, #tpu.memory_space<vmem>>, %arg8: memref<1x64xf32, #tpu.memory_space<vmem>>, %arg9: memref<2x64xf32, #tpu.memory_space<vmem>>) attributes {dimension_semantics = [], scalar_prefetch = 0 : i64, scratch_operands = 0 : i64, tpu.core_type = #tpu.core_type<tc>} {
    %c0 = arith.constant 0 : index
    %c0_0 = arith.constant 0 : index
    %0 = vector.load %arg0[%c0, %c0_0] : memref<16x16xbf16, #tpu.memory_space<vmem>>, vector<16x16xbf16>
    %c0_1 = arith.constant 0 : index
    %c0_2 = arith.constant 0 : index
    %1 = vector.load %arg1[%c0_1, %c0_2] : memref<16x512xbf16, #tpu.memory_space<vmem>>, vector<16x512xbf16>
    %c0_3 = arith.constant 0 : index
    %c0_4 = arith.constant 0 : index
    %2 = vector.load %arg2[%c0_3, %c0_4] : memref<64x256xbf16, #tpu.memory_space<vmem>>, vector<64x256xbf16>
    %c0_5 = arith.constant 0 : index
    %c0_6 = arith.constant 0 : index
    %3 = vector.load %arg3[%c0_5, %c0_6] : memref<1x256xf32, #tpu.memory_space<vmem>>, vector<1x256xf32>
    %cst = arith.constant dense<0.000000e+00> : vector<16x512xf32>
    %4 = tpu.matmul %0, %1, %cst {dimension_numbers = #tpu.dot_dimension_numbers<[1], [0], [0], [1], [0, 0, 1, 1], [], []>} : vector<16x16xbf16>, vector<16x512xbf16>, vector<16x512xf32> -> vector<16x512xf32>
    %5 = vector.extract_strided_slice %4 {offsets = [0, 0], sizes = [2, 256], strides = [1, 1]} : vector<16x512xf32> to vector<2x256xf32>
    %6 = vector.extract_strided_slice %4 {offsets = [14, 256], sizes = [2, 256], strides = [1, 1]} : vector<16x512xf32> to vector<2x256xf32>
    %7 = arith.addf %5, %6 : vector<2x256xf32>
    %8 = vector.broadcast %3 : vector<1x256xf32> to vector<2x256xf32>
    %9 = arith.addf %7, %8 : vector<2x256xf32>
    %10 = vector.extract_strided_slice %4 {offsets = [2, 0], sizes = [2, 256], strides = [1, 1]} : vector<16x512xf32> to vector<2x256xf32>
    %11 = vector.extract_strided_slice %4 {offsets = [12, 256], sizes = [2, 256], strides = [1, 1]} : vector<16x512xf32> to vector<2x256xf32>
    %12 = arith.addf %10, %11 : vector<2x256xf32>
    %13 = vector.broadcast %3 : vector<1x256xf32> to vector<2x256xf32>
    %14 = arith.addf %12, %13 : vector<2x256xf32>
    %15 = vector.extract_strided_slice %4 {offsets = [4, 0], sizes = [2, 256], strides = [1, 1]} : vector<16x512xf32> to vector<2x256xf32>
    %16 = vector.extract_strided_slice %4 {offsets = [10, 256], sizes = [2, 256], strides = [1, 1]} : vector<16x512xf32> to vector<2x256xf32>
    %17 = arith.addf %15, %16 : vector<2x256xf32>
    %18 = vector.broadcast %3 : vector<1x256xf32> to vector<2x256xf32>
    %19 = arith.addf %17, %18 : vector<2x256xf32>
    %20 = vector.extract_strided_slice %4 {offsets = [6, 0], sizes = [2, 256], strides = [1, 1]} : vector<16x512xf32> to vector<2x256xf32>
    %21 = vector.extract_strided_slice %4 {offsets = [8, 256], sizes = [2, 256], strides = [1, 1]} : vector<16x512xf32> to vector<2x256xf32>
    %22 = arith.addf %20, %21 : vector<2x256xf32>
    %23 = vector.broadcast %3 : vector<1x256xf32> to vector<2x256xf32>
    %24 = arith.addf %22, %23 : vector<2x256xf32>
    %25 = vector.extract_strided_slice %4 {offsets = [8, 0], sizes = [2, 256], strides = [1, 1]} : vector<16x512xf32> to vector<2x256xf32>
    %26 = vector.extract_strided_slice %4 {offsets = [6, 256], sizes = [2, 256], strides = [1, 1]} : vector<16x512xf32> to vector<2x256xf32>
    %27 = arith.addf %25, %26 : vector<2x256xf32>
    %28 = vector.broadcast %3 : vector<1x256xf32> to vector<2x256xf32>
    %29 = arith.addf %27, %28 : vector<2x256xf32>
    %30 = vector.extract_strided_slice %4 {offsets = [10, 0], sizes = [2, 256], strides = [1, 1]} : vector<16x512xf32> to vector<2x256xf32>
    %31 = vector.extract_strided_slice %4 {offsets = [4, 256], sizes = [2, 256], strides = [1, 1]} : vector<16x512xf32> to vector<2x256xf32>
    %32 = arith.addf %30, %31 : vector<2x256xf32>
    %33 = vector.broadcast %3 : vector<1x256xf32> to vector<2x256xf32>
    %34 = arith.addf %32, %33 : vector<2x256xf32>
    %35 = vector.extract_strided_slice %4 {offsets = [12, 0], sizes = [2, 256], strides = [1, 1]} : vector<16x512xf32> to vector<2x256xf32>
    %36 = vector.extract_strided_slice %4 {offsets = [2, 256], sizes = [2, 256], strides = [1, 1]} : vector<16x512xf32> to vector<2x256xf32>
    %37 = arith.addf %35, %36 : vector<2x256xf32>
    %38 = vector.broadcast %3 : vector<1x256xf32> to vector<2x256xf32>
    %39 = arith.addf %37, %38 : vector<2x256xf32>
    %40 = vector.extract_strided_slice %4 {offsets = [14, 0], sizes = [2, 256], strides = [1, 1]} : vector<16x512xf32> to vector<2x256xf32>
    %41 = vector.extract_strided_slice %4 {offsets = [0, 256], sizes = [2, 256], strides = [1, 1]} : vector<16x512xf32> to vector<2x256xf32>
    %42 = arith.addf %40, %41 : vector<2x256xf32>
    %43 = vector.broadcast %3 : vector<1x256xf32> to vector<2x256xf32>
    %44 = arith.addf %42, %43 : vector<2x256xf32>
    %cst_7 = arith.constant 0.000000e+00 : f32
    %45 = vector.broadcast %cst_7 : f32 to vector<2x64xf32>
    %cst_8 = arith.constant 0.000000e+00 : f32
    %46 = vector.broadcast %cst_8 : f32 to vector<2x64xf32>
    %47 = arith.truncf %45 : vector<2x64xf32> to vector<2x64xbf16>
    %cst_9 = arith.constant dense<0.000000e+00> : vector<2x256xf32>
    %48 = tpu.matmul %47, %2, %cst_9 {dimension_numbers = #tpu.dot_dimension_numbers<[1], [0], [0], [1], [0, 0, 1, 1], [], []>} : vector<2x64xbf16>, vector<64x256xbf16>, vector<2x256xf32> -> vector<2x256xf32>
    %49 = arith.addf %9, %48 : vector<2x256xf32>
    %50 = vector.extract_strided_slice %49 {offsets = [0, 0], sizes = [2, 192], strides = [1, 1]} : vector<2x256xf32> to vector<2x192xf32>
    %51 = arith.negf %50 : vector<2x192xf32>
    %52 = math.exp %51 : vector<2x192xf32>
    %cst_10 = arith.constant 1.000000e+00 : f32
    %53 = vector.broadcast %cst_10 : f32 to vector<2x192xf32>
    %54 = arith.addf %53, %52 : vector<2x192xf32>
    %55 = arith.divf %53, %54 : vector<2x192xf32>
    %56 = vector.extract_strided_slice %49 {offsets = [0, 192], sizes = [2, 64], strides = [1, 1]} : vector<2x256xf32> to vector<2x64xf32>
    %57 = math.tanh %56 : vector<2x64xf32>
    %58 = vector.extract_strided_slice %55 {offsets = [0, 0], sizes = [2, 64], strides = [1, 1]} : vector<2x192xf32> to vector<2x64xf32>
    %59 = vector.extract_strided_slice %55 {offsets = [0, 64], sizes = [2, 64], strides = [1, 1]} : vector<2x192xf32> to vector<2x64xf32>
    %60 = vector.extract_strided_slice %55 {offsets = [0, 128], sizes = [2, 64], strides = [1, 1]} : vector<2x192xf32> to vector<2x64xf32>
    %61 = arith.mulf %59, %46 : vector<2x64xf32>
    %62 = arith.mulf %58, %57 : vector<2x64xf32>
    %63 = arith.addf %61, %62 : vector<2x64xf32>
    %64 = math.tanh %63 : vector<2x64xf32>
    %65 = arith.mulf %60, %64 : vector<2x64xf32>
    %66 = arith.truncf %65 : vector<2x64xf32> to vector<2x64xbf16>
    %cst_11 = arith.constant dense<0.000000e+00> : vector<2x256xf32>
    %67 = tpu.matmul %66, %2, %cst_11 {dimension_numbers = #tpu.dot_dimension_numbers<[1], [0], [0], [1], [0, 0, 1, 1], [], []>} : vector<2x64xbf16>, vector<64x256xbf16>, vector<2x256xf32> -> vector<2x256xf32>
    %68 = arith.addf %14, %67 : vector<2x256xf32>
    %69 = vector.extract_strided_slice %68 {offsets = [0, 0], sizes = [2, 192], strides = [1, 1]} : vector<2x256xf32> to vector<2x192xf32>
    %70 = arith.negf %69 : vector<2x192xf32>
    %71 = math.exp %70 : vector<2x192xf32>
    %cst_12 = arith.constant 1.000000e+00 : f32
    %72 = vector.broadcast %cst_12 : f32 to vector<2x192xf32>
    %73 = arith.addf %72, %71 : vector<2x192xf32>
    %74 = arith.divf %72, %73 : vector<2x192xf32>
    %75 = vector.extract_strided_slice %68 {offsets = [0, 192], sizes = [2, 64], strides = [1, 1]} : vector<2x256xf32> to vector<2x64xf32>
    %76 = math.tanh %75 : vector<2x64xf32>
    %77 = vector.extract_strided_slice %74 {offsets = [0, 0], sizes = [2, 64], strides = [1, 1]} : vector<2x192xf32> to vector<2x64xf32>
    %78 = vector.extract_strided_slice %74 {offsets = [0, 64], sizes = [2, 64], strides = [1, 1]} : vector<2x192xf32> to vector<2x64xf32>
    %79 = vector.extract_strided_slice %74 {offsets = [0, 128], sizes = [2, 64], strides = [1, 1]} : vector<2x192xf32> to vector<2x64xf32>
    %80 = arith.mulf %78, %63 : vector<2x64xf32>
    %81 = arith.mulf %77, %76 : vector<2x64xf32>
    %82 = arith.addf %80, %81 : vector<2x64xf32>
    %83 = math.tanh %82 : vector<2x64xf32>
    %84 = arith.mulf %79, %83 : vector<2x64xf32>
    %85 = arith.truncf %84 : vector<2x64xf32> to vector<2x64xbf16>
    %cst_13 = arith.constant dense<0.000000e+00> : vector<2x256xf32>
    %86 = tpu.matmul %85, %2, %cst_13 {dimension_numbers = #tpu.dot_dimension_numbers<[1], [0], [0], [1], [0, 0, 1, 1], [], []>} : vector<2x64xbf16>, vector<64x256xbf16>, vector<2x256xf32> -> vector<2x256xf32>
    %87 = arith.addf %19, %86 : vector<2x256xf32>
    %88 = vector.extract_strided_slice %87 {offsets = [0, 0], sizes = [2, 192], strides = [1, 1]} : vector<2x256xf32> to vector<2x192xf32>
    %89 = arith.negf %88 : vector<2x192xf32>
    %90 = math.exp %89 : vector<2x192xf32>
    %cst_14 = arith.constant 1.000000e+00 : f32
    %91 = vector.broadcast %cst_14 : f32 to vector<2x192xf32>
    %92 = arith.addf %91, %90 : vector<2x192xf32>
    %93 = arith.divf %91, %92 : vector<2x192xf32>
    %94 = vector.extract_strided_slice %87 {offsets = [0, 192], sizes = [2, 64], strides = [1, 1]} : vector<2x256xf32> to vector<2x64xf32>
    %95 = math.tanh %94 : vector<2x64xf32>
    %96 = vector.extract_strided_slice %93 {offsets = [0, 0], sizes = [2, 64], strides = [1, 1]} : vector<2x192xf32> to vector<2x64xf32>
    %97 = vector.extract_strided_slice %93 {offsets = [0, 64], sizes = [2, 64], strides = [1, 1]} : vector<2x192xf32> to vector<2x64xf32>
    %98 = vector.extract_strided_slice %93 {offsets = [0, 128], sizes = [2, 64], strides = [1, 1]} : vector<2x192xf32> to vector<2x64xf32>
    %99 = arith.mulf %97, %82 : vector<2x64xf32>
    %100 = arith.mulf %96, %95 : vector<2x64xf32>
    %101 = arith.addf %99, %100 : vector<2x64xf32>
    %102 = math.tanh %101 : vector<2x64xf32>
    %103 = arith.mulf %98, %102 : vector<2x64xf32>
    %104 = arith.truncf %103 : vector<2x64xf32> to vector<2x64xbf16>
    %cst_15 = arith.constant dense<0.000000e+00> : vector<2x256xf32>
    %105 = tpu.matmul %104, %2, %cst_15 {dimension_numbers = #tpu.dot_dimension_numbers<[1], [0], [0], [1], [0, 0, 1, 1], [], []>} : vector<2x64xbf16>, vector<64x256xbf16>, vector<2x256xf32> -> vector<2x256xf32>
    %106 = arith.addf %24, %105 : vector<2x256xf32>
    %107 = vector.extract_strided_slice %106 {offsets = [0, 0], sizes = [2, 192], strides = [1, 1]} : vector<2x256xf32> to vector<2x192xf32>
    %108 = arith.negf %107 : vector<2x192xf32>
    %109 = math.exp %108 : vector<2x192xf32>
    %cst_16 = arith.constant 1.000000e+00 : f32
    %110 = vector.broadcast %cst_16 : f32 to vector<2x192xf32>
    %111 = arith.addf %110, %109 : vector<2x192xf32>
    %112 = arith.divf %110, %111 : vector<2x192xf32>
    %113 = vector.extract_strided_slice %106 {offsets = [0, 192], sizes = [2, 64], strides = [1, 1]} : vector<2x256xf32> to vector<2x64xf32>
    %114 = math.tanh %113 : vector<2x64xf32>
    %115 = vector.extract_strided_slice %112 {offsets = [0, 0], sizes = [2, 64], strides = [1, 1]} : vector<2x192xf32> to vector<2x64xf32>
    %116 = vector.extract_strided_slice %112 {offsets = [0, 64], sizes = [2, 64], strides = [1, 1]} : vector<2x192xf32> to vector<2x64xf32>
    %117 = vector.extract_strided_slice %112 {offsets = [0, 128], sizes = [2, 64], strides = [1, 1]} : vector<2x192xf32> to vector<2x64xf32>
    %118 = arith.mulf %116, %101 : vector<2x64xf32>
    %119 = arith.mulf %115, %114 : vector<2x64xf32>
    %120 = arith.addf %118, %119 : vector<2x64xf32>
    %121 = math.tanh %120 : vector<2x64xf32>
    %122 = arith.mulf %117, %121 : vector<2x64xf32>
    %123 = arith.truncf %122 : vector<2x64xf32> to vector<2x64xbf16>
    %cst_17 = arith.constant dense<0.000000e+00> : vector<2x256xf32>
    %124 = tpu.matmul %123, %2, %cst_17 {dimension_numbers = #tpu.dot_dimension_numbers<[1], [0], [0], [1], [0, 0, 1, 1], [], []>} : vector<2x64xbf16>, vector<64x256xbf16>, vector<2x256xf32> -> vector<2x256xf32>
    %125 = arith.addf %29, %124 : vector<2x256xf32>
    %126 = vector.extract_strided_slice %125 {offsets = [0, 0], sizes = [2, 192], strides = [1, 1]} : vector<2x256xf32> to vector<2x192xf32>
    %127 = arith.negf %126 : vector<2x192xf32>
    %128 = math.exp %127 : vector<2x192xf32>
    %cst_18 = arith.constant 1.000000e+00 : f32
    %129 = vector.broadcast %cst_18 : f32 to vector<2x192xf32>
    %130 = arith.addf %129, %128 : vector<2x192xf32>
    %131 = arith.divf %129, %130 : vector<2x192xf32>
    %132 = vector.extract_strided_slice %125 {offsets = [0, 192], sizes = [2, 64], strides = [1, 1]} : vector<2x256xf32> to vector<2x64xf32>
    %133 = math.tanh %132 : vector<2x64xf32>
    %134 = vector.extract_strided_slice %131 {offsets = [0, 0], sizes = [2, 64], strides = [1, 1]} : vector<2x192xf32> to vector<2x64xf32>
    %135 = vector.extract_strided_slice %131 {offsets = [0, 64], sizes = [2, 64], strides = [1, 1]} : vector<2x192xf32> to vector<2x64xf32>
    %136 = vector.extract_strided_slice %131 {offsets = [0, 128], sizes = [2, 64], strides = [1, 1]} : vector<2x192xf32> to vector<2x64xf32>
    %137 = arith.mulf %135, %120 : vector<2x64xf32>
    %138 = arith.mulf %134, %133 : vector<2x64xf32>
    %139 = arith.addf %137, %138 : vector<2x64xf32>
    %140 = math.tanh %139 : vector<2x64xf32>
    %141 = arith.mulf %136, %140 : vector<2x64xf32>
    %142 = arith.truncf %141 : vector<2x64xf32> to vector<2x64xbf16>
    %cst_19 = arith.constant dense<0.000000e+00> : vector<2x256xf32>
    %143 = tpu.matmul %142, %2, %cst_19 {dimension_numbers = #tpu.dot_dimension_numbers<[1], [0], [0], [1], [0, 0, 1, 1], [], []>} : vector<2x64xbf16>, vector<64x256xbf16>, vector<2x256xf32> -> vector<2x256xf32>
    %144 = arith.addf %34, %143 : vector<2x256xf32>
    %145 = vector.extract_strided_slice %144 {offsets = [0, 0], sizes = [2, 192], strides = [1, 1]} : vector<2x256xf32> to vector<2x192xf32>
    %146 = arith.negf %145 : vector<2x192xf32>
    %147 = math.exp %146 : vector<2x192xf32>
    %cst_20 = arith.constant 1.000000e+00 : f32
    %148 = vector.broadcast %cst_20 : f32 to vector<2x192xf32>
    %149 = arith.addf %148, %147 : vector<2x192xf32>
    %150 = arith.divf %148, %149 : vector<2x192xf32>
    %151 = vector.extract_strided_slice %144 {offsets = [0, 192], sizes = [2, 64], strides = [1, 1]} : vector<2x256xf32> to vector<2x64xf32>
    %152 = math.tanh %151 : vector<2x64xf32>
    %153 = vector.extract_strided_slice %150 {offsets = [0, 0], sizes = [2, 64], strides = [1, 1]} : vector<2x192xf32> to vector<2x64xf32>
    %154 = vector.extract_strided_slice %150 {offsets = [0, 64], sizes = [2, 64], strides = [1, 1]} : vector<2x192xf32> to vector<2x64xf32>
    %155 = vector.extract_strided_slice %150 {offsets = [0, 128], sizes = [2, 64], strides = [1, 1]} : vector<2x192xf32> to vector<2x64xf32>
    %156 = arith.mulf %154, %139 : vector<2x64xf32>
    %157 = arith.mulf %153, %152 : vector<2x64xf32>
    %158 = arith.addf %156, %157 : vector<2x64xf32>
    %159 = math.tanh %158 : vector<2x64xf32>
    %160 = arith.mulf %155, %159 : vector<2x64xf32>
    %161 = arith.truncf %160 : vector<2x64xf32> to vector<2x64xbf16>
    %cst_21 = arith.constant dense<0.000000e+00> : vector<2x256xf32>
    %162 = tpu.matmul %161, %2, %cst_21 {dimension_numbers = #tpu.dot_dimension_numbers<[1], [0], [0], [1], [0, 0, 1, 1], [], []>} : vector<2x64xbf16>, vector<64x256xbf16>, vector<2x256xf32> -> vector<2x256xf32>
    %163 = arith.addf %39, %162 : vector<2x256xf32>
    %164 = vector.extract_strided_slice %163 {offsets = [0, 0], sizes = [2, 192], strides = [1, 1]} : vector<2x256xf32> to vector<2x192xf32>
    %165 = arith.negf %164 : vector<2x192xf32>
    %166 = math.exp %165 : vector<2x192xf32>
    %cst_22 = arith.constant 1.000000e+00 : f32
    %167 = vector.broadcast %cst_22 : f32 to vector<2x192xf32>
    %168 = arith.addf %167, %166 : vector<2x192xf32>
    %169 = arith.divf %167, %168 : vector<2x192xf32>
    %170 = vector.extract_strided_slice %163 {offsets = [0, 192], sizes = [2, 64], strides = [1, 1]} : vector<2x256xf32> to vector<2x64xf32>
    %171 = math.tanh %170 : vector<2x64xf32>
    %172 = vector.extract_strided_slice %169 {offsets = [0, 0], sizes = [2, 64], strides = [1, 1]} : vector<2x192xf32> to vector<2x64xf32>
    %173 = vector.extract_strided_slice %169 {offsets = [0, 64], sizes = [2, 64], strides = [1, 1]} : vector<2x192xf32> to vector<2x64xf32>
    %174 = vector.extract_strided_slice %169 {offsets = [0, 128], sizes = [2, 64], strides = [1, 1]} : vector<2x192xf32> to vector<2x64xf32>
    %175 = arith.mulf %173, %158 : vector<2x64xf32>
    %176 = arith.mulf %172, %171 : vector<2x64xf32>
    %177 = arith.addf %175, %176 : vector<2x64xf32>
    %178 = math.tanh %177 : vector<2x64xf32>
    %179 = arith.mulf %174, %178 : vector<2x64xf32>
    %180 = arith.truncf %179 : vector<2x64xf32> to vector<2x64xbf16>
    %cst_23 = arith.constant dense<0.000000e+00> : vector<2x256xf32>
    %181 = tpu.matmul %180, %2, %cst_23 {dimension_numbers = #tpu.dot_dimension_numbers<[1], [0], [0], [1], [0, 0, 1, 1], [], []>} : vector<2x64xbf16>, vector<64x256xbf16>, vector<2x256xf32> -> vector<2x256xf32>
    %182 = arith.addf %44, %181 : vector<2x256xf32>
    %183 = vector.extract_strided_slice %182 {offsets = [0, 0], sizes = [2, 192], strides = [1, 1]} : vector<2x256xf32> to vector<2x192xf32>
    %184 = arith.negf %183 : vector<2x192xf32>
    %185 = math.exp %184 : vector<2x192xf32>
    %cst_24 = arith.constant 1.000000e+00 : f32
    %186 = vector.broadcast %cst_24 : f32 to vector<2x192xf32>
    %187 = arith.addf %186, %185 : vector<2x192xf32>
    %188 = arith.divf %186, %187 : vector<2x192xf32>
    %189 = vector.extract_strided_slice %182 {offsets = [0, 192], sizes = [2, 64], strides = [1, 1]} : vector<2x256xf32> to vector<2x64xf32>
    %190 = math.tanh %189 : vector<2x64xf32>
    %191 = vector.extract_strided_slice %188 {offsets = [0, 0], sizes = [2, 64], strides = [1, 1]} : vector<2x192xf32> to vector<2x64xf32>
    %192 = vector.extract_strided_slice %188 {offsets = [0, 64], sizes = [2, 64], strides = [1, 1]} : vector<2x192xf32> to vector<2x64xf32>
    %193 = vector.extract_strided_slice %188 {offsets = [0, 128], sizes = [2, 64], strides = [1, 1]} : vector<2x192xf32> to vector<2x64xf32>
    %194 = arith.mulf %192, %177 : vector<2x64xf32>
    %195 = arith.mulf %191, %190 : vector<2x64xf32>
    %196 = arith.addf %194, %195 : vector<2x64xf32>
    %197 = math.tanh %196 : vector<2x64xf32>
    %198 = arith.mulf %193, %197 : vector<2x64xf32>
    %199 = vector.extract_strided_slice %65 {offsets = [0, 0], sizes = [2, 32], strides = [1, 1]} : vector<2x64xf32> to vector<2x32xf32>
    %200 = vector.extract_strided_slice %198 {offsets = [0, 32], sizes = [2, 32], strides = [1, 1]} : vector<2x64xf32> to vector<2x32xf32>
    %201 = tpu.concatenate %199, %200 in 1 : vector<2x32xf32>, vector<2x32xf32> -> vector<2x64xf32>
    %202 = vector.extract_strided_slice %84 {offsets = [0, 0], sizes = [2, 32], strides = [1, 1]} : vector<2x64xf32> to vector<2x32xf32>
    %203 = vector.extract_strided_slice %179 {offsets = [0, 32], sizes = [2, 32], strides = [1, 1]} : vector<2x64xf32> to vector<2x32xf32>
    %204 = tpu.concatenate %202, %203 in 1 : vector<2x32xf32>, vector<2x32xf32> -> vector<2x64xf32>
    %205 = vector.extract_strided_slice %103 {offsets = [0, 0], sizes = [2, 32], strides = [1, 1]} : vector<2x64xf32> to vector<2x32xf32>
    %206 = vector.extract_strided_slice %160 {offsets = [0, 32], sizes = [2, 32], strides = [1, 1]} : vector<2x64xf32> to vector<2x32xf32>
    %207 = tpu.concatenate %205, %206 in 1 : vector<2x32xf32>, vector<2x32xf32> -> vector<2x64xf32>
    %208 = vector.extract_strided_slice %122 {offsets = [0, 0], sizes = [2, 32], strides = [1, 1]} : vector<2x64xf32> to vector<2x32xf32>
    %209 = vector.extract_strided_slice %141 {offsets = [0, 32], sizes = [2, 32], strides = [1, 1]} : vector<2x64xf32> to vector<2x32xf32>
    %210 = tpu.concatenate %208, %209 in 1 : vector<2x32xf32>, vector<2x32xf32> -> vector<2x64xf32>
    %211 = vector.extract_strided_slice %141 {offsets = [0, 0], sizes = [2, 32], strides = [1, 1]} : vector<2x64xf32> to vector<2x32xf32>
    %212 = vector.extract_strided_slice %122 {offsets = [0, 32], sizes = [2, 32], strides = [1, 1]} : vector<2x64xf32> to vector<2x32xf32>
    %213 = tpu.concatenate %211, %212 in 1 : vector<2x32xf32>, vector<2x32xf32> -> vector<2x64xf32>
    %214 = vector.extract_strided_slice %160 {offsets = [0, 0], sizes = [2, 32], strides = [1, 1]} : vector<2x64xf32> to vector<2x32xf32>
    %215 = vector.extract_strided_slice %103 {offsets = [0, 32], sizes = [2, 32], strides = [1, 1]} : vector<2x64xf32> to vector<2x32xf32>
    %216 = tpu.concatenate %214, %215 in 1 : vector<2x32xf32>, vector<2x32xf32> -> vector<2x64xf32>
    %217 = vector.extract_strided_slice %179 {offsets = [0, 0], sizes = [2, 32], strides = [1, 1]} : vector<2x64xf32> to vector<2x32xf32>
    %218 = vector.extract_strided_slice %84 {offsets = [0, 32], sizes = [2, 32], strides = [1, 1]} : vector<2x64xf32> to vector<2x32xf32>
    %219 = tpu.concatenate %217, %218 in 1 : vector<2x32xf32>, vector<2x32xf32> -> vector<2x64xf32>
    %220 = vector.extract_strided_slice %198 {offsets = [0, 0], sizes = [2, 32], strides = [1, 1]} : vector<2x64xf32> to vector<2x32xf32>
    %221 = vector.extract_strided_slice %65 {offsets = [0, 32], sizes = [2, 32], strides = [1, 1]} : vector<2x64xf32> to vector<2x32xf32>
    %222 = tpu.concatenate %220, %221 in 1 : vector<2x32xf32>, vector<2x32xf32> -> vector<2x64xf32>
    %223 = tpu.concatenate %201, %204, %207, %210, %213, %216, %219, %222 in 0 : vector<2x64xf32>, vector<2x64xf32>, vector<2x64xf32>, vector<2x64xf32>, vector<2x64xf32>, vector<2x64xf32>, vector<2x64xf32>, vector<2x64xf32> -> vector<16x64xf32>
    %224 = arith.truncf %223 : vector<16x64xf32> to vector<16x64xbf16>
    %c0_25 = arith.constant 0 : index
    %c0_26 = arith.constant 0 : index
    %225 = vector.load %arg4[%c0_25, %c0_26] : memref<64x512xbf16, #tpu.memory_space<vmem>>, vector<64x512xbf16>
    %c0_27 = arith.constant 0 : index
    %c0_28 = arith.constant 0 : index
    %226 = vector.load %arg5[%c0_27, %c0_28] : memref<64x256xbf16, #tpu.memory_space<vmem>>, vector<64x256xbf16>
    %c0_29 = arith.constant 0 : index
    %c0_30 = arith.constant 0 : index
    %227 = vector.load %arg6[%c0_29, %c0_30] : memref<1x256xf32, #tpu.memory_space<vmem>>, vector<1x256xf32>
    %cst_31 = arith.constant dense<0.000000e+00> : vector<16x512xf32>
    %228 = tpu.matmul %224, %225, %cst_31 {dimension_numbers = #tpu.dot_dimension_numbers<[1], [0], [0], [1], [0, 0, 1, 1], [], []>} : vector<16x64xbf16>, vector<64x512xbf16>, vector<16x512xf32> -> vector<16x512xf32>
    %229 = vector.extract_strided_slice %228 {offsets = [0, 0], sizes = [2, 256], strides = [1, 1]} : vector<16x512xf32> to vector<2x256xf32>
    %230 = vector.extract_strided_slice %228 {offsets = [14, 256], sizes = [2, 256], strides = [1, 1]} : vector<16x512xf32> to vector<2x256xf32>
    %231 = arith.addf %229, %230 : vector<2x256xf32>
    %232 = vector.broadcast %227 : vector<1x256xf32> to vector<2x256xf32>
    %233 = arith.addf %231, %232 : vector<2x256xf32>
    %234 = vector.extract_strided_slice %228 {offsets = [2, 0], sizes = [2, 256], strides = [1, 1]} : vector<16x512xf32> to vector<2x256xf32>
    %235 = vector.extract_strided_slice %228 {offsets = [12, 256], sizes = [2, 256], strides = [1, 1]} : vector<16x512xf32> to vector<2x256xf32>
    %236 = arith.addf %234, %235 : vector<2x256xf32>
    %237 = vector.broadcast %227 : vector<1x256xf32> to vector<2x256xf32>
    %238 = arith.addf %236, %237 : vector<2x256xf32>
    %239 = vector.extract_strided_slice %228 {offsets = [4, 0], sizes = [2, 256], strides = [1, 1]} : vector<16x512xf32> to vector<2x256xf32>
    %240 = vector.extract_strided_slice %228 {offsets = [10, 256], sizes = [2, 256], strides = [1, 1]} : vector<16x512xf32> to vector<2x256xf32>
    %241 = arith.addf %239, %240 : vector<2x256xf32>
    %242 = vector.broadcast %227 : vector<1x256xf32> to vector<2x256xf32>
    %243 = arith.addf %241, %242 : vector<2x256xf32>
    %244 = vector.extract_strided_slice %228 {offsets = [6, 0], sizes = [2, 256], strides = [1, 1]} : vector<16x512xf32> to vector<2x256xf32>
    %245 = vector.extract_strided_slice %228 {offsets = [8, 256], sizes = [2, 256], strides = [1, 1]} : vector<16x512xf32> to vector<2x256xf32>
    %246 = arith.addf %244, %245 : vector<2x256xf32>
    %247 = vector.broadcast %227 : vector<1x256xf32> to vector<2x256xf32>
    %248 = arith.addf %246, %247 : vector<2x256xf32>
    %249 = vector.extract_strided_slice %228 {offsets = [8, 0], sizes = [2, 256], strides = [1, 1]} : vector<16x512xf32> to vector<2x256xf32>
    %250 = vector.extract_strided_slice %228 {offsets = [6, 256], sizes = [2, 256], strides = [1, 1]} : vector<16x512xf32> to vector<2x256xf32>
    %251 = arith.addf %249, %250 : vector<2x256xf32>
    %252 = vector.broadcast %227 : vector<1x256xf32> to vector<2x256xf32>
    %253 = arith.addf %251, %252 : vector<2x256xf32>
    %254 = vector.extract_strided_slice %228 {offsets = [10, 0], sizes = [2, 256], strides = [1, 1]} : vector<16x512xf32> to vector<2x256xf32>
    %255 = vector.extract_strided_slice %228 {offsets = [4, 256], sizes = [2, 256], strides = [1, 1]} : vector<16x512xf32> to vector<2x256xf32>
    %256 = arith.addf %254, %255 : vector<2x256xf32>
    %257 = vector.broadcast %227 : vector<1x256xf32> to vector<2x256xf32>
    %258 = arith.addf %256, %257 : vector<2x256xf32>
    %259 = vector.extract_strided_slice %228 {offsets = [12, 0], sizes = [2, 256], strides = [1, 1]} : vector<16x512xf32> to vector<2x256xf32>
    %260 = vector.extract_strided_slice %228 {offsets = [2, 256], sizes = [2, 256], strides = [1, 1]} : vector<16x512xf32> to vector<2x256xf32>
    %261 = arith.addf %259, %260 : vector<2x256xf32>
    %262 = vector.broadcast %227 : vector<1x256xf32> to vector<2x256xf32>
    %263 = arith.addf %261, %262 : vector<2x256xf32>
    %264 = vector.extract_strided_slice %228 {offsets = [14, 0], sizes = [2, 256], strides = [1, 1]} : vector<16x512xf32> to vector<2x256xf32>
    %265 = vector.extract_strided_slice %228 {offsets = [0, 256], sizes = [2, 256], strides = [1, 1]} : vector<16x512xf32> to vector<2x256xf32>
    %266 = arith.addf %264, %265 : vector<2x256xf32>
    %267 = vector.broadcast %227 : vector<1x256xf32> to vector<2x256xf32>
    %268 = arith.addf %266, %267 : vector<2x256xf32>
    %cst_32 = arith.constant 0.000000e+00 : f32
    %269 = vector.broadcast %cst_32 : f32 to vector<2x64xf32>
    %cst_33 = arith.constant 0.000000e+00 : f32
    %270 = vector.broadcast %cst_33 : f32 to vector<2x64xf32>
    %271 = arith.truncf %269 : vector<2x64xf32> to vector<2x64xbf16>
    %cst_34 = arith.constant dense<0.000000e+00> : vector<2x256xf32>
    %272 = tpu.matmul %271, %226, %cst_34 {dimension_numbers = #tpu.dot_dimension_numbers<[1], [0], [0], [1], [0, 0, 1, 1], [], []>} : vector<2x64xbf16>, vector<64x256xbf16>, vector<2x256xf32> -> vector<2x256xf32>
    %273 = arith.addf %233, %272 : vector<2x256xf32>
    %274 = vector.extract_strided_slice %273 {offsets = [0, 0], sizes = [2, 192], strides = [1, 1]} : vector<2x256xf32> to vector<2x192xf32>
    %275 = arith.negf %274 : vector<2x192xf32>
    %276 = math.exp %275 : vector<2x192xf32>
    %cst_35 = arith.constant 1.000000e+00 : f32
    %277 = vector.broadcast %cst_35 : f32 to vector<2x192xf32>
    %278 = arith.addf %277, %276 : vector<2x192xf32>
    %279 = arith.divf %277, %278 : vector<2x192xf32>
    %280 = vector.extract_strided_slice %273 {offsets = [0, 192], sizes = [2, 64], strides = [1, 1]} : vector<2x256xf32> to vector<2x64xf32>
    %281 = math.tanh %280 : vector<2x64xf32>
    %282 = vector.extract_strided_slice %279 {offsets = [0, 0], sizes = [2, 64], strides = [1, 1]} : vector<2x192xf32> to vector<2x64xf32>
    %283 = vector.extract_strided_slice %279 {offsets = [0, 64], sizes = [2, 64], strides = [1, 1]} : vector<2x192xf32> to vector<2x64xf32>
    %284 = vector.extract_strided_slice %279 {offsets = [0, 128], sizes = [2, 64], strides = [1, 1]} : vector<2x192xf32> to vector<2x64xf32>
    %285 = arith.mulf %283, %270 : vector<2x64xf32>
    %286 = arith.mulf %282, %281 : vector<2x64xf32>
    %287 = arith.addf %285, %286 : vector<2x64xf32>
    %288 = math.tanh %287 : vector<2x64xf32>
    %289 = arith.mulf %284, %288 : vector<2x64xf32>
    %290 = arith.truncf %289 : vector<2x64xf32> to vector<2x64xbf16>
    %cst_36 = arith.constant dense<0.000000e+00> : vector<2x256xf32>
    %291 = tpu.matmul %290, %226, %cst_36 {dimension_numbers = #tpu.dot_dimension_numbers<[1], [0], [0], [1], [0, 0, 1, 1], [], []>} : vector<2x64xbf16>, vector<64x256xbf16>, vector<2x256xf32> -> vector<2x256xf32>
    %292 = arith.addf %238, %291 : vector<2x256xf32>
    %293 = vector.extract_strided_slice %292 {offsets = [0, 0], sizes = [2, 192], strides = [1, 1]} : vector<2x256xf32> to vector<2x192xf32>
    %294 = arith.negf %293 : vector<2x192xf32>
    %295 = math.exp %294 : vector<2x192xf32>
    %cst_37 = arith.constant 1.000000e+00 : f32
    %296 = vector.broadcast %cst_37 : f32 to vector<2x192xf32>
    %297 = arith.addf %296, %295 : vector<2x192xf32>
    %298 = arith.divf %296, %297 : vector<2x192xf32>
    %299 = vector.extract_strided_slice %292 {offsets = [0, 192], sizes = [2, 64], strides = [1, 1]} : vector<2x256xf32> to vector<2x64xf32>
    %300 = math.tanh %299 : vector<2x64xf32>
    %301 = vector.extract_strided_slice %298 {offsets = [0, 0], sizes = [2, 64], strides = [1, 1]} : vector<2x192xf32> to vector<2x64xf32>
    %302 = vector.extract_strided_slice %298 {offsets = [0, 64], sizes = [2, 64], strides = [1, 1]} : vector<2x192xf32> to vector<2x64xf32>
    %303 = vector.extract_strided_slice %298 {offsets = [0, 128], sizes = [2, 64], strides = [1, 1]} : vector<2x192xf32> to vector<2x64xf32>
    %304 = arith.mulf %302, %287 : vector<2x64xf32>
    %305 = arith.mulf %301, %300 : vector<2x64xf32>
    %306 = arith.addf %304, %305 : vector<2x64xf32>
    %307 = math.tanh %306 : vector<2x64xf32>
    %308 = arith.mulf %303, %307 : vector<2x64xf32>
    %309 = arith.truncf %308 : vector<2x64xf32> to vector<2x64xbf16>
    %cst_38 = arith.constant dense<0.000000e+00> : vector<2x256xf32>
    %310 = tpu.matmul %309, %226, %cst_38 {dimension_numbers = #tpu.dot_dimension_numbers<[1], [0], [0], [1], [0, 0, 1, 1], [], []>} : vector<2x64xbf16>, vector<64x256xbf16>, vector<2x256xf32> -> vector<2x256xf32>
    %311 = arith.addf %243, %310 : vector<2x256xf32>
    %312 = vector.extract_strided_slice %311 {offsets = [0, 0], sizes = [2, 192], strides = [1, 1]} : vector<2x256xf32> to vector<2x192xf32>
    %313 = arith.negf %312 : vector<2x192xf32>
    %314 = math.exp %313 : vector<2x192xf32>
    %cst_39 = arith.constant 1.000000e+00 : f32
    %315 = vector.broadcast %cst_39 : f32 to vector<2x192xf32>
    %316 = arith.addf %315, %314 : vector<2x192xf32>
    %317 = arith.divf %315, %316 : vector<2x192xf32>
    %318 = vector.extract_strided_slice %311 {offsets = [0, 192], sizes = [2, 64], strides = [1, 1]} : vector<2x256xf32> to vector<2x64xf32>
    %319 = math.tanh %318 : vector<2x64xf32>
    %320 = vector.extract_strided_slice %317 {offsets = [0, 0], sizes = [2, 64], strides = [1, 1]} : vector<2x192xf32> to vector<2x64xf32>
    %321 = vector.extract_strided_slice %317 {offsets = [0, 64], sizes = [2, 64], strides = [1, 1]} : vector<2x192xf32> to vector<2x64xf32>
    %322 = vector.extract_strided_slice %317 {offsets = [0, 128], sizes = [2, 64], strides = [1, 1]} : vector<2x192xf32> to vector<2x64xf32>
    %323 = arith.mulf %321, %306 : vector<2x64xf32>
    %324 = arith.mulf %320, %319 : vector<2x64xf32>
    %325 = arith.addf %323, %324 : vector<2x64xf32>
    %326 = math.tanh %325 : vector<2x64xf32>
    %327 = arith.mulf %322, %326 : vector<2x64xf32>
    %328 = arith.truncf %327 : vector<2x64xf32> to vector<2x64xbf16>
    %cst_40 = arith.constant dense<0.000000e+00> : vector<2x256xf32>
    %329 = tpu.matmul %328, %226, %cst_40 {dimension_numbers = #tpu.dot_dimension_numbers<[1], [0], [0], [1], [0, 0, 1, 1], [], []>} : vector<2x64xbf16>, vector<64x256xbf16>, vector<2x256xf32> -> vector<2x256xf32>
    %330 = arith.addf %248, %329 : vector<2x256xf32>
    %331 = vector.extract_strided_slice %330 {offsets = [0, 0], sizes = [2, 192], strides = [1, 1]} : vector<2x256xf32> to vector<2x192xf32>
    %332 = arith.negf %331 : vector<2x192xf32>
    %333 = math.exp %332 : vector<2x192xf32>
    %cst_41 = arith.constant 1.000000e+00 : f32
    %334 = vector.broadcast %cst_41 : f32 to vector<2x192xf32>
    %335 = arith.addf %334, %333 : vector<2x192xf32>
    %336 = arith.divf %334, %335 : vector<2x192xf32>
    %337 = vector.extract_strided_slice %330 {offsets = [0, 192], sizes = [2, 64], strides = [1, 1]} : vector<2x256xf32> to vector<2x64xf32>
    %338 = math.tanh %337 : vector<2x64xf32>
    %339 = vector.extract_strided_slice %336 {offsets = [0, 0], sizes = [2, 64], strides = [1, 1]} : vector<2x192xf32> to vector<2x64xf32>
    %340 = vector.extract_strided_slice %336 {offsets = [0, 64], sizes = [2, 64], strides = [1, 1]} : vector<2x192xf32> to vector<2x64xf32>
    %341 = vector.extract_strided_slice %336 {offsets = [0, 128], sizes = [2, 64], strides = [1, 1]} : vector<2x192xf32> to vector<2x64xf32>
    %342 = arith.mulf %340, %325 : vector<2x64xf32>
    %343 = arith.mulf %339, %338 : vector<2x64xf32>
    %344 = arith.addf %342, %343 : vector<2x64xf32>
    %345 = math.tanh %344 : vector<2x64xf32>
    %346 = arith.mulf %341, %345 : vector<2x64xf32>
    %347 = arith.truncf %346 : vector<2x64xf32> to vector<2x64xbf16>
    %cst_42 = arith.constant dense<0.000000e+00> : vector<2x256xf32>
    %348 = tpu.matmul %347, %226, %cst_42 {dimension_numbers = #tpu.dot_dimension_numbers<[1], [0], [0], [1], [0, 0, 1, 1], [], []>} : vector<2x64xbf16>, vector<64x256xbf16>, vector<2x256xf32> -> vector<2x256xf32>
    %349 = arith.addf %253, %348 : vector<2x256xf32>
    %350 = vector.extract_strided_slice %349 {offsets = [0, 0], sizes = [2, 192], strides = [1, 1]} : vector<2x256xf32> to vector<2x192xf32>
    %351 = arith.negf %350 : vector<2x192xf32>
    %352 = math.exp %351 : vector<2x192xf32>
    %cst_43 = arith.constant 1.000000e+00 : f32
    %353 = vector.broadcast %cst_43 : f32 to vector<2x192xf32>
    %354 = arith.addf %353, %352 : vector<2x192xf32>
    %355 = arith.divf %353, %354 : vector<2x192xf32>
    %356 = vector.extract_strided_slice %349 {offsets = [0, 192], sizes = [2, 64], strides = [1, 1]} : vector<2x256xf32> to vector<2x64xf32>
    %357 = math.tanh %356 : vector<2x64xf32>
    %358 = vector.extract_strided_slice %355 {offsets = [0, 0], sizes = [2, 64], strides = [1, 1]} : vector<2x192xf32> to vector<2x64xf32>
    %359 = vector.extract_strided_slice %355 {offsets = [0, 64], sizes = [2, 64], strides = [1, 1]} : vector<2x192xf32> to vector<2x64xf32>
    %360 = vector.extract_strided_slice %355 {offsets = [0, 128], sizes = [2, 64], strides = [1, 1]} : vector<2x192xf32> to vector<2x64xf32>
    %361 = arith.mulf %359, %344 : vector<2x64xf32>
    %362 = arith.mulf %358, %357 : vector<2x64xf32>
    %363 = arith.addf %361, %362 : vector<2x64xf32>
    %364 = math.tanh %363 : vector<2x64xf32>
    %365 = arith.mulf %360, %364 : vector<2x64xf32>
    %366 = arith.truncf %365 : vector<2x64xf32> to vector<2x64xbf16>
    %cst_44 = arith.constant dense<0.000000e+00> : vector<2x256xf32>
    %367 = tpu.matmul %366, %226, %cst_44 {dimension_numbers = #tpu.dot_dimension_numbers<[1], [0], [0], [1], [0, 0, 1, 1], [], []>} : vector<2x64xbf16>, vector<64x256xbf16>, vector<2x256xf32> -> vector<2x256xf32>
    %368 = arith.addf %258, %367 : vector<2x256xf32>
    %369 = vector.extract_strided_slice %368 {offsets = [0, 0], sizes = [2, 192], strides = [1, 1]} : vector<2x256xf32> to vector<2x192xf32>
    %370 = arith.negf %369 : vector<2x192xf32>
    %371 = math.exp %370 : vector<2x192xf32>
    %cst_45 = arith.constant 1.000000e+00 : f32
    %372 = vector.broadcast %cst_45 : f32 to vector<2x192xf32>
    %373 = arith.addf %372, %371 : vector<2x192xf32>
    %374 = arith.divf %372, %373 : vector<2x192xf32>
    %375 = vector.extract_strided_slice %368 {offsets = [0, 192], sizes = [2, 64], strides = [1, 1]} : vector<2x256xf32> to vector<2x64xf32>
    %376 = math.tanh %375 : vector<2x64xf32>
    %377 = vector.extract_strided_slice %374 {offsets = [0, 0], sizes = [2, 64], strides = [1, 1]} : vector<2x192xf32> to vector<2x64xf32>
    %378 = vector.extract_strided_slice %374 {offsets = [0, 64], sizes = [2, 64], strides = [1, 1]} : vector<2x192xf32> to vector<2x64xf32>
    %379 = vector.extract_strided_slice %374 {offsets = [0, 128], sizes = [2, 64], strides = [1, 1]} : vector<2x192xf32> to vector<2x64xf32>
    %380 = arith.mulf %378, %363 : vector<2x64xf32>
    %381 = arith.mulf %377, %376 : vector<2x64xf32>
    %382 = arith.addf %380, %381 : vector<2x64xf32>
    %383 = math.tanh %382 : vector<2x64xf32>
    %384 = arith.mulf %379, %383 : vector<2x64xf32>
    %385 = arith.truncf %384 : vector<2x64xf32> to vector<2x64xbf16>
    %cst_46 = arith.constant dense<0.000000e+00> : vector<2x256xf32>
    %386 = tpu.matmul %385, %226, %cst_46 {dimension_numbers = #tpu.dot_dimension_numbers<[1], [0], [0], [1], [0, 0, 1, 1], [], []>} : vector<2x64xbf16>, vector<64x256xbf16>, vector<2x256xf32> -> vector<2x256xf32>
    %387 = arith.addf %263, %386 : vector<2x256xf32>
    %388 = vector.extract_strided_slice %387 {offsets = [0, 0], sizes = [2, 192], strides = [1, 1]} : vector<2x256xf32> to vector<2x192xf32>
    %389 = arith.negf %388 : vector<2x192xf32>
    %390 = math.exp %389 : vector<2x192xf32>
    %cst_47 = arith.constant 1.000000e+00 : f32
    %391 = vector.broadcast %cst_47 : f32 to vector<2x192xf32>
    %392 = arith.addf %391, %390 : vector<2x192xf32>
    %393 = arith.divf %391, %392 : vector<2x192xf32>
    %394 = vector.extract_strided_slice %387 {offsets = [0, 192], sizes = [2, 64], strides = [1, 1]} : vector<2x256xf32> to vector<2x64xf32>
    %395 = math.tanh %394 : vector<2x64xf32>
    %396 = vector.extract_strided_slice %393 {offsets = [0, 0], sizes = [2, 64], strides = [1, 1]} : vector<2x192xf32> to vector<2x64xf32>
    %397 = vector.extract_strided_slice %393 {offsets = [0, 64], sizes = [2, 64], strides = [1, 1]} : vector<2x192xf32> to vector<2x64xf32>
    %398 = vector.extract_strided_slice %393 {offsets = [0, 128], sizes = [2, 64], strides = [1, 1]} : vector<2x192xf32> to vector<2x64xf32>
    %399 = arith.mulf %397, %382 : vector<2x64xf32>
    %400 = arith.mulf %396, %395 : vector<2x64xf32>
    %401 = arith.addf %399, %400 : vector<2x64xf32>
    %402 = math.tanh %401 : vector<2x64xf32>
    %403 = arith.mulf %398, %402 : vector<2x64xf32>
    %404 = arith.truncf %403 : vector<2x64xf32> to vector<2x64xbf16>
    %cst_48 = arith.constant dense<0.000000e+00> : vector<2x256xf32>
    %405 = tpu.matmul %404, %226, %cst_48 {dimension_numbers = #tpu.dot_dimension_numbers<[1], [0], [0], [1], [0, 0, 1, 1], [], []>} : vector<2x64xbf16>, vector<64x256xbf16>, vector<2x256xf32> -> vector<2x256xf32>
    %406 = arith.addf %268, %405 : vector<2x256xf32>
    %407 = vector.extract_strided_slice %406 {offsets = [0, 0], sizes = [2, 192], strides = [1, 1]} : vector<2x256xf32> to vector<2x192xf32>
    %408 = arith.negf %407 : vector<2x192xf32>
    %409 = math.exp %408 : vector<2x192xf32>
    %cst_49 = arith.constant 1.000000e+00 : f32
    %410 = vector.broadcast %cst_49 : f32 to vector<2x192xf32>
    %411 = arith.addf %410, %409 : vector<2x192xf32>
    %412 = arith.divf %410, %411 : vector<2x192xf32>
    %413 = vector.extract_strided_slice %406 {offsets = [0, 192], sizes = [2, 64], strides = [1, 1]} : vector<2x256xf32> to vector<2x64xf32>
    %414 = math.tanh %413 : vector<2x64xf32>
    %415 = vector.extract_strided_slice %412 {offsets = [0, 0], sizes = [2, 64], strides = [1, 1]} : vector<2x192xf32> to vector<2x64xf32>
    %416 = vector.extract_strided_slice %412 {offsets = [0, 64], sizes = [2, 64], strides = [1, 1]} : vector<2x192xf32> to vector<2x64xf32>
    %417 = vector.extract_strided_slice %412 {offsets = [0, 128], sizes = [2, 64], strides = [1, 1]} : vector<2x192xf32> to vector<2x64xf32>
    %418 = arith.mulf %416, %401 : vector<2x64xf32>
    %419 = arith.mulf %415, %414 : vector<2x64xf32>
    %420 = arith.addf %418, %419 : vector<2x64xf32>
    %421 = math.tanh %420 : vector<2x64xf32>
    %422 = arith.mulf %417, %421 : vector<2x64xf32>
    %423 = vector.extract_strided_slice %289 {offsets = [0, 0], sizes = [2, 32], strides = [1, 1]} : vector<2x64xf32> to vector<2x32xf32>
    %424 = vector.extract_strided_slice %422 {offsets = [0, 32], sizes = [2, 32], strides = [1, 1]} : vector<2x64xf32> to vector<2x32xf32>
    %425 = tpu.concatenate %423, %424 in 1 : vector<2x32xf32>, vector<2x32xf32> -> vector<2x64xf32>
    %426 = vector.extract_strided_slice %308 {offsets = [0, 0], sizes = [2, 32], strides = [1, 1]} : vector<2x64xf32> to vector<2x32xf32>
    %427 = vector.extract_strided_slice %403 {offsets = [0, 32], sizes = [2, 32], strides = [1, 1]} : vector<2x64xf32> to vector<2x32xf32>
    %428 = tpu.concatenate %426, %427 in 1 : vector<2x32xf32>, vector<2x32xf32> -> vector<2x64xf32>
    %429 = vector.extract_strided_slice %327 {offsets = [0, 0], sizes = [2, 32], strides = [1, 1]} : vector<2x64xf32> to vector<2x32xf32>
    %430 = vector.extract_strided_slice %384 {offsets = [0, 32], sizes = [2, 32], strides = [1, 1]} : vector<2x64xf32> to vector<2x32xf32>
    %431 = tpu.concatenate %429, %430 in 1 : vector<2x32xf32>, vector<2x32xf32> -> vector<2x64xf32>
    %432 = vector.extract_strided_slice %346 {offsets = [0, 0], sizes = [2, 32], strides = [1, 1]} : vector<2x64xf32> to vector<2x32xf32>
    %433 = vector.extract_strided_slice %365 {offsets = [0, 32], sizes = [2, 32], strides = [1, 1]} : vector<2x64xf32> to vector<2x32xf32>
    %434 = tpu.concatenate %432, %433 in 1 : vector<2x32xf32>, vector<2x32xf32> -> vector<2x64xf32>
    %435 = vector.extract_strided_slice %365 {offsets = [0, 0], sizes = [2, 32], strides = [1, 1]} : vector<2x64xf32> to vector<2x32xf32>
    %436 = vector.extract_strided_slice %346 {offsets = [0, 32], sizes = [2, 32], strides = [1, 1]} : vector<2x64xf32> to vector<2x32xf32>
    %437 = tpu.concatenate %435, %436 in 1 : vector<2x32xf32>, vector<2x32xf32> -> vector<2x64xf32>
    %438 = vector.extract_strided_slice %384 {offsets = [0, 0], sizes = [2, 32], strides = [1, 1]} : vector<2x64xf32> to vector<2x32xf32>
    %439 = vector.extract_strided_slice %327 {offsets = [0, 32], sizes = [2, 32], strides = [1, 1]} : vector<2x64xf32> to vector<2x32xf32>
    %440 = tpu.concatenate %438, %439 in 1 : vector<2x32xf32>, vector<2x32xf32> -> vector<2x64xf32>
    %441 = vector.extract_strided_slice %403 {offsets = [0, 0], sizes = [2, 32], strides = [1, 1]} : vector<2x64xf32> to vector<2x32xf32>
    %442 = vector.extract_strided_slice %308 {offsets = [0, 32], sizes = [2, 32], strides = [1, 1]} : vector<2x64xf32> to vector<2x32xf32>
    %443 = tpu.concatenate %441, %442 in 1 : vector<2x32xf32>, vector<2x32xf32> -> vector<2x64xf32>
    %444 = vector.extract_strided_slice %422 {offsets = [0, 0], sizes = [2, 32], strides = [1, 1]} : vector<2x64xf32> to vector<2x32xf32>
    %445 = vector.extract_strided_slice %289 {offsets = [0, 32], sizes = [2, 32], strides = [1, 1]} : vector<2x64xf32> to vector<2x32xf32>
    %446 = tpu.concatenate %444, %445 in 1 : vector<2x32xf32>, vector<2x32xf32> -> vector<2x64xf32>
    %447 = tpu.concatenate %425, %428, %431, %434, %437, %440, %443, %446 in 0 : vector<2x64xf32>, vector<2x64xf32>, vector<2x64xf32>, vector<2x64xf32>, vector<2x64xf32>, vector<2x64xf32>, vector<2x64xf32>, vector<2x64xf32> -> vector<16x64xf32>
    %448 = arith.truncf %447 : vector<16x64xf32> to vector<16x64xbf16>
    %c0_50 = arith.constant 0 : index
    %c0_51 = arith.constant 0 : index
    %449 = vector.load %arg7[%c0_50, %c0_51] : memref<64x64xbf16, #tpu.memory_space<vmem>>, vector<64x64xbf16>
    %cst_52 = arith.constant dense<0.000000e+00> : vector<16x64xf32>
    %450 = tpu.matmul %448, %449, %cst_52 {dimension_numbers = #tpu.dot_dimension_numbers<[1], [0], [0], [1], [0, 0, 1, 1], [], []>} : vector<16x64xbf16>, vector<64x64xbf16>, vector<16x64xf32> -> vector<16x64xf32>
    %451 = math.tanh %450 : vector<16x64xf32>
    %c0_53 = arith.constant 0 : index
    %c0_54 = arith.constant 0 : index
    %452 = vector.load %arg8[%c0_53, %c0_54] : memref<1x64xf32, #tpu.memory_space<vmem>>, vector<1x64xf32>
    %453 = vector.broadcast %452 : vector<1x64xf32> to vector<16x64xf32>
    %454 = arith.mulf %451, %453 : vector<16x64xf32>
    %cst_55 = arith.constant dense<0.000000e+00> : vector<16xf32>
    %455 = vector.multi_reduction <add>, %454, %cst_55 [1] : vector<16x64xf32> to vector<16xf32>
    %456 = vector.shape_cast %455 : vector<16xf32> to vector<16x1xf32>
    %457 = vector.extract_strided_slice %456 {offsets = [0, 0], sizes = [2, 1], strides = [1, 1]} : vector<16x1xf32> to vector<2x1xf32>
    %458 = vector.extract_strided_slice %456 {offsets = [2, 0], sizes = [2, 1], strides = [1, 1]} : vector<16x1xf32> to vector<2x1xf32>
    %459 = vector.extract_strided_slice %456 {offsets = [4, 0], sizes = [2, 1], strides = [1, 1]} : vector<16x1xf32> to vector<2x1xf32>
    %460 = vector.extract_strided_slice %456 {offsets = [6, 0], sizes = [2, 1], strides = [1, 1]} : vector<16x1xf32> to vector<2x1xf32>
    %461 = vector.extract_strided_slice %456 {offsets = [8, 0], sizes = [2, 1], strides = [1, 1]} : vector<16x1xf32> to vector<2x1xf32>
    %462 = vector.extract_strided_slice %456 {offsets = [10, 0], sizes = [2, 1], strides = [1, 1]} : vector<16x1xf32> to vector<2x1xf32>
    %463 = vector.extract_strided_slice %456 {offsets = [12, 0], sizes = [2, 1], strides = [1, 1]} : vector<16x1xf32> to vector<2x1xf32>
    %464 = vector.extract_strided_slice %456 {offsets = [14, 0], sizes = [2, 1], strides = [1, 1]} : vector<16x1xf32> to vector<2x1xf32>
    %465 = tpu.concatenate %457, %458, %459, %460, %461, %462, %463, %464 in 1 : vector<2x1xf32>, vector<2x1xf32>, vector<2x1xf32>, vector<2x1xf32>, vector<2x1xf32>, vector<2x1xf32>, vector<2x1xf32>, vector<2x1xf32> -> vector<2x8xf32>
    %cst_56 = arith.constant dense<0xFF800000> : vector<2xf32>
    %466 = vector.multi_reduction <maximumf>, %465, %cst_56 [1] : vector<2x8xf32> to vector<2xf32>
    %467 = vector.shape_cast %466 : vector<2xf32> to vector<2x1xf32>
    %468 = vector.broadcast %467 : vector<2x1xf32> to vector<2x8xf32>
    %469 = arith.subf %465, %468 : vector<2x8xf32>
    %470 = math.exp %469 : vector<2x8xf32>
    %cst_57 = arith.constant dense<0.000000e+00> : vector<2xf32>
    %471 = vector.multi_reduction <add>, %470, %cst_57 [1] : vector<2x8xf32> to vector<2xf32>
    %472 = vector.shape_cast %471 : vector<2xf32> to vector<2x1xf32>
    %473 = tpu.reciprocal %472 {approx = true} : vector<2x1xf32> -> vector<2x1xf32>
    %474 = vector.broadcast %473 : vector<2x1xf32> to vector<2x8xf32>
    %475 = arith.mulf %470, %474 : vector<2x8xf32>
    %cst_58 = arith.constant 0.000000e+00 : f32
    %476 = vector.broadcast %cst_58 : f32 to vector<2x64xf32>
    %477 = vector.extract_strided_slice %475 {offsets = [0, 0], sizes = [2, 1], strides = [1, 1]} : vector<2x8xf32> to vector<2x1xf32>
    %478 = vector.broadcast %477 : vector<2x1xf32> to vector<2x64xf32>
    %479 = arith.mulf %425, %478 : vector<2x64xf32>
    %480 = arith.addf %476, %479 : vector<2x64xf32>
    %481 = vector.extract_strided_slice %475 {offsets = [0, 1], sizes = [2, 1], strides = [1, 1]} : vector<2x8xf32> to vector<2x1xf32>
    %482 = vector.broadcast %481 : vector<2x1xf32> to vector<2x64xf32>
    %483 = arith.mulf %428, %482 : vector<2x64xf32>
    %484 = arith.addf %480, %483 : vector<2x64xf32>
    %485 = vector.extract_strided_slice %475 {offsets = [0, 2], sizes = [2, 1], strides = [1, 1]} : vector<2x8xf32> to vector<2x1xf32>
    %486 = vector.broadcast %485 : vector<2x1xf32> to vector<2x64xf32>
    %487 = arith.mulf %431, %486 : vector<2x64xf32>
    %488 = arith.addf %484, %487 : vector<2x64xf32>
    %489 = vector.extract_strided_slice %475 {offsets = [0, 3], sizes = [2, 1], strides = [1, 1]} : vector<2x8xf32> to vector<2x1xf32>
    %490 = vector.broadcast %489 : vector<2x1xf32> to vector<2x64xf32>
    %491 = arith.mulf %434, %490 : vector<2x64xf32>
    %492 = arith.addf %488, %491 : vector<2x64xf32>
    %493 = vector.extract_strided_slice %475 {offsets = [0, 4], sizes = [2, 1], strides = [1, 1]} : vector<2x8xf32> to vector<2x1xf32>
    %494 = vector.broadcast %493 : vector<2x1xf32> to vector<2x64xf32>
    %495 = arith.mulf %437, %494 : vector<2x64xf32>
    %496 = arith.addf %492, %495 : vector<2x64xf32>
    %497 = vector.extract_strided_slice %475 {offsets = [0, 5], sizes = [2, 1], strides = [1, 1]} : vector<2x8xf32> to vector<2x1xf32>
    %498 = vector.broadcast %497 : vector<2x1xf32> to vector<2x64xf32>
    %499 = arith.mulf %440, %498 : vector<2x64xf32>
    %500 = arith.addf %496, %499 : vector<2x64xf32>
    %501 = vector.extract_strided_slice %475 {offsets = [0, 6], sizes = [2, 1], strides = [1, 1]} : vector<2x8xf32> to vector<2x1xf32>
    %502 = vector.broadcast %501 : vector<2x1xf32> to vector<2x64xf32>
    %503 = arith.mulf %443, %502 : vector<2x64xf32>
    %504 = arith.addf %500, %503 : vector<2x64xf32>
    %505 = vector.extract_strided_slice %475 {offsets = [0, 7], sizes = [2, 1], strides = [1, 1]} : vector<2x8xf32> to vector<2x1xf32>
    %506 = vector.broadcast %505 : vector<2x1xf32> to vector<2x64xf32>
    %507 = arith.mulf %446, %506 : vector<2x64xf32>
    %508 = arith.addf %504, %507 : vector<2x64xf32>
    %c0_59 = arith.constant 0 : index
    %c0_60 = arith.constant 0 : index
    %509 = vector.load %arg9[%c0_59, %c0_60] : memref<2x64xf32, #tpu.memory_space<vmem>>, vector<2x64xf32>
    tpu.vector_store %arg9[%c0_59, %c0_60], %508 {strides = array<i32>} : memref<2x64xf32, #tpu.memory_space<vmem>>, vector<2x64xf32>,
    return
  }
}

</mosaic_0001>

<bundles_post_ra>
// kernel: bilstm_atte_forward.1
= control target key start
LH: loop header
LB: loop body
LE: loop exit
PB: predicated region body
PF: predicated region fallthrough
CT: control target
= control target key end

     0   :  { %14 = vsyncpa [#allocation3], 0  ;;  %s3424_s0 = inlined_call_operand.vmem [shape: bf16[16,16], index: 0, kind: input, shape index: {}]   ;;  %s3425_s1 = inlined_call_operand.hbm [shape: bf16[16,512], index: 1, kind: input, shape index: {}]   ;;  %s3426_s2 = inlined_call_operand.hbm [shape: bf16[64,256], index: 2, kind: input, shape index: {}]   ;;  %s3427_s3 = inlined_call_operand.vmem [shape: f32[1,256], index: 3, kind: input, shape index: {}]   ;;  %s3428_s4 = inlined_call_operand.hbm [shape: bf16[64,512], index: 4, kind: input, shape index: {}]   ;;  %s3429_s5 = inlined_call_operand.vmem [shape: bf16[64,256], index: 5, kind: input, shape index: {}]   ;;  %s3430_s6 = inlined_call_operand.vmem [shape: f32[1,256], index: 6, kind: input, shape index: {}]   ;;  %s3431_s7 = inlined_call_operand.hbm [shape: bf16[64,64], index: 7, kind: input, shape index: {}]   ;;  %s3432_s8 = inlined_call_operand.vmem [shape: f32[1,64], index: 8, kind: input, shape index: {}]   ;;  %s3433_s9 = inlined_call_operand.hbm [shape: f32[2,64], index: 9, kind: output, shape index: {}]  }
   0x1   :  { %15 = vsyncpa [#allocation6], 0 }
   0x2   :  { %16 = vsyncpa [#allocation9], 0 }
   0x3   :  { %17 = vsyncpa [#allocation4], 0  ;;  %s2773_s30 = smov [#allocation5]   ;;  %s2655_s13 = scalar_lea.hbm %s3426_s2, 1024 }
   0x4   :  { %s37_s10 = sshll.u32 %s2773_s30, 4  ;;  %p2656_p0 = scmp.ne.s32.totalorder %s3426_s2, %s2655_s13  ;;  %s38_s10 = int_to_ptr.vmem [resolvable:$true] %s37_s10 }
   0x5   :  { %p2659_p1 = scmp.lt.u32.totalorder %s2655_s13, %s3426_s2 }
   0x7   :  { %p2661_p2 = pnand %p2659_p1, %p2656_p0 }
   0x9   :  { %2664 = shalt.err (!%p2661_p2)
}
   0xa   :  { %s2665_s18 = scalar_lea.vmem %s38_s10, 1024  ;;  %p2670_p4 = scmp.lt.s32.totalorder %s38_s10, %s38_s10 }
   0xb   :  { %p2666_p3 = scmp.ne.s32.totalorder %s38_s10, %s2665_s18  ;;  %p2671_p5 = scmp.lt.s32.totalorder %s2665_s18, %s2665_s18 }
   0xd   :  { %p2672_p6 = por %p2671_p5, %p2670_p4 }
   0xf   :  { %p2673_p7 = pnand %p2672_p6, %p2666_p3 }
  0x11   :  { %2676 = shalt.err (!%p2673_p7)
}
  0x12   :  { %s2774_s19 = smov 128   ;;  %s2775_s20 = smov 8  }
  0x13   :  { %43 = dma.hbm_to_vmem [thread:$0]  %s3426_s2, 1024, %s38_s10, [#allocation6], %s2774_s19, %s2774_s19, %s2775_s20  }
  0x14   :  { %s2776_s23 = smov [#allocation2]   ;;  %s2677_s27 = scalar_lea.hbm %s3425_s1, 512 }
  0x15   :  { %s25_s24 = sshll.u32 %s2776_s23, 4  ;;  %p2678_p8 = scmp.ne.s32.totalorder %s3425_s1, %s2677_s27  ;;  %s26_s24 = int_to_ptr.vmem [resolvable:$true] %s25_s24 }
  0x16   :  { %p2681_p9 = scmp.lt.u32.totalorder %s2677_s27, %s3425_s1 }
  0x18   :  { %p2683_p10 = pnand %p2681_p9, %p2678_p8 }
  0x1a   :  { %2686 = shalt.err (!%p2683_p10)
}
  0x1b   :  { %s2687_s12 = scalar_lea.vmem %s26_s24, 512  ;;  %p2692_p12 = scmp.lt.s32.totalorder %s26_s24, %s26_s24 }
  0x1c   :  { %p2688_p11 = scmp.ne.s32.totalorder %s26_s24, %s2687_s12  ;;  %p2693_p13 = scmp.lt.s32.totalorder %s2687_s12, %s2687_s12 }
  0x1e   :  { %p2694_p0 = por %p2693_p13, %p2692_p12 }
  0x20   :  { %p2695_p1 = pnand %p2694_p0, %p2688_p11 }
  0x22   :  { %2698 = shalt.err (!%p2695_p1)
}
  0x23   :  { %s2777_s2 = smov 256   ;;  %s2778_s10 = smov 16  }
  0x24   :  { %31 = dma.hbm_to_vmem [thread:$0]  %s3425_s1, 512, %s26_s24, [#allocation3], %s2777_s2, %s2777_s2, %s2778_s10  }
  0x25   :  { %s2779_s15 = smov [#allocation7]   ;;  %s2780_s17 = smov [#allocation8]  }
  0x26   :  { %s51_s16 = sshll.u32 %s2779_s15, 4  ;;  %s67_s18 = sshll.u32 %s2780_s17, 4  ;;  %s52_s16 = int_to_ptr.vmem [resolvable:$true] %s51_s16  ;;  %s2868_s18 = int_to_ptr.vmem [resolvable:$true] %s67_s18 }
  0x27   :  { %s2699_s21 = scalar_lea.hbm %s3428_s4, 2048 }
  0x28   :  { %p2700_p2 = scmp.ne.s32.totalorder %s3428_s4, %s2699_s21  ;;  %p2703_p3 = scmp.lt.u32.totalorder %s2699_s21, %s3428_s4 }
  0x2a   :  { %p2705_p4 = pnand %p2703_p3, %p2700_p2 }
  0x2c   :  { %2708 = shalt.err (!%p2705_p4)
}
  0x2d   :  { %s2709_s1 = scalar_lea.vmem %s52_s16, 2048  ;;  %p2714_p6 = scmp.lt.s32.totalorder %s52_s16, %s52_s16 }
  0x2e   :  { %p2710_p5 = scmp.ne.s32.totalorder %s52_s16, %s2709_s1  ;;  %p2715_p7 = scmp.lt.s32.totalorder %s2709_s1, %s2709_s1 }
  0x30   :  { %p2716_p8 = por %p2715_p7, %p2714_p6 }
  0x32   :  { %p2717_p9 = pnand %p2716_p8, %p2710_p5 }
  0x34   :  { %2720 = shalt.err (!%p2717_p9)
}
  0x35   :  { %57 = dma.hbm_to_vmem [thread:$0]  %s3428_s4, 2048, %s52_s16, [#allocation6], %s2777_s2, %s2777_s2, %s2778_s10  }
  0x36   :  { %s2721_s30 = scalar_lea.hbm %s3431_s7, 512 }
  0x37   :  { %p2722_p10 = scmp.ne.s32.totalorder %s3431_s7, %s2721_s30  ;;  %p2725_p11 = scmp.lt.u32.totalorder %s2721_s30, %s3431_s7 }
  0x39   :  { %p2727_p12 = pnand %p2725_p11, %p2722_p10 }
  0x3b   :  { %2730 = shalt.err (!%p2727_p12)
}
  0x3c   :  { %s2731_s15 = scalar_lea.vmem %s2868_s18, 512  ;;  %p2736_p0 = scmp.lt.s32.totalorder %s2868_s18, %s2868_s18 }
  0x3d   :  { %p2732_p13 = scmp.ne.s32.totalorder %s2868_s18, %s2731_s15  ;;  %p2737_p1 = scmp.lt.s32.totalorder %s2731_s15, %s2731_s15 }
  0x3f   :  { %p2738_p2 = por %p2737_p1, %p2736_p0 }
  0x41   :  { %p2739_p3 = pnand %p2738_p2, %p2732_p13 }
  0x43   :  { %2742 = shalt.err (!%p2739_p3)
}
  0x44   :  { %s2781_s4 = smov 64   ;;  %s2782_s2 = smov 4  }
  0x45   :  { %73 = dma.hbm_to_vmem [thread:$0]  %s3431_s7, 512, %s2868_s18, [#allocation9], %s2781_s4, %s2781_s4, %s2782_s2  }
  0x46   :  { %2765 = dma.done.wait [#allocation3], 512  }
  0x47   :  { %2766 = vsyncadd [#allocation3], 4294966784 }
  0x48   :  { %2767 = dma.done.wait [#allocation6], 3072  }
  0x49   :  { %2768 = vsyncadd [#allocation6], 4294964224 }
  0x4a   :  { %2769 = dma.done.wait [#allocation9], 512  }
  0x4b   :  { %2770 = vsyncadd [#allocation9], 4294966784  ;;  %v2783_v0 = vmov 0   ;;  %v2396_v1 = vld [vmem:[#allocation2 + $0x4] ss:$16 sps:$4 sm:$0xff]   ;;  %vm129_vm0 = vcmask 130048   ;;  %v228_v14 = vlaneseq }
  0x4c   :  { %165 = vmatprep.mubr.bf16.mxu1 %v2783_v0  ;;  %342 = vmatprep.mubr.bf16.mxu0 %v2783_v0  ;;  %v2398_v2 = vld [vmem:[#allocation2] ss:$16 sps:$4 sm:$0xff]   ;;  %v2903_v3 = vld [vmem:[#allocation5 + $0x4] ss:$8 sps:$4 sm:$0xff]   ;;  %v2403_v6 = vld [vmem:[#allocation2 + $0x8] ss:$16 sps:$4 sm:$0xff]  }
  0x4d   :  { %133 = vmatprep.subr.bf16.mxu1 %v2396_v1  ;;  %v2905_v4 = vld [vmem:[#allocation5] ss:$8 sps:$4 sm:$0xff]   ;;  %310 = vmatprep.subr.bf16.mxu0 %v2903_v3  ;;  %v2405_v7 = vld [vmem:[#allocation2 + $0xc] ss:$16 sps:$4 sm:$0xff]   ;;  %v2915_v9 = vld [vmem:[#allocation5 + $0x10] ss:$8 sps:$4 sm:$0xff]  }
  0x4e   :  { %134 = vmatpush1.bf16.msra.mxu1 %v2398_v2  ;;  %v2402_v5 = vld [vmem:[%s3424_s0] sm:$0xff]   ;;  %311 = vmatpush1.bf16.msra.mxu0 %v2905_v4  ;;  %v2912_v8 = vld [vmem:[#allocation5 + $0x14] ss:$8 sps:$4 sm:$0xff]   ;;  %v2928_v13 = vld [vmem:[#allocation5 + $0x30] ss:$8 sps:$4 sm:$0xff]   ;;  %v2954_v17 = vshrl.u32 %v228_v14, 7 }
  0x4f   :  { %176 = vmatprep.subr.bf16.mxu1 %v2405_v7  ;;  %312 = vmatprep.subr.bf16.mxu0 %v2912_v8  ;;  %v2918_v10 = vld [vmem:[#allocation5 + $0x24] ss:$8 sps:$4 sm:$0xff]   ;;  %v2921_v11 = vld [vmem:[#allocation5 + $0x20] ss:$8 sps:$4 sm:$0xff]   ;;  %v2923_v12 = vld [vmem:[#allocation5 + $0x34] ss:$8 sps:$4 sm:$0xff]  }
  0x50   :  { %v230_v20 = vsub.s32 0, %v2954_v17  ;;  %v103_v21 = vld [vmem:[%s3427_s3] sm:$0x3]  ;;  %v234_v22 = vsub.s32 1, %v2954_v17  ;;  %vm306_vm1 = vcmask 523264   ;;  %vm992_vm2 = vcmask 261120  }
  0x51   :  { %2261 = vmatmul.mubr.msk.bf16.vlgmr.msra.gmra.mrb[0].mxu1 %vm129_vm0, %v2402_v5  ;;  %vm1022_vm3 = vcmask 1041408   ;;  %vm1024_vm4 = vcmask 1043456   ;;  %vm1026_vm5 = vcmask 1045504   ;;  %vm2785_vm6 = vmmov 0  }
  0x52   :  { %177 = vmatpush1.bf16.msra.mxu1 %v2403_v6  ;;  %208 = vmatprep.mubr.bf16.mxu1 %v2783_v0  ;;  %v231_v27 = vrot.slane %v103_v21, %v230_v20  ;;  %v235_v31 = vrot.slane %v103_v21, %v234_v22  ;;  %vm2138_vm7 = vcmask 7168   ;;  %vm2140_vm8 = vcmask 15360  }
  0x53   :  { %387 = vmatprep.subr.bf16.mxu1 %v2903_v3  ;;  %313 = vmatpush1.bf16.msra.mxu0 %v2915_v9  ;;  %vm2142_vm9 = vcmask 23552   ;;  %vm2144_vm10 = vcmask 31744   ;;  %vm2146_vm11 = vcmask 39936   ;;  %vm2148_vm12 = vcmask 48128  }
  0x54   :  { %314 = vmatprep.subr.bf16.mxu0 %v2918_v10  ;;  %vm2150_vm13 = vcmask 56320   ;;  %vm2152_vm14 = vcmask 58368   ;;  %vm2237_vm15 = vcmask 517120  }
  0x57   :  { %315 = vmatpush1.bf16.msra.mxu0 %v2921_v11 }
  0x58   :  { %316 = vmatprep.subr.bf16.mxu0 %v2923_v12 }
  0x59   :  { %2262 = vmatmul.mubr.msk.bf16.vlgmr.msra.gmra.mrb[4].mxu1 %vm129_vm0, %v2402_v5 }
  0x5a   :  { %388 = vmatpush1.bf16.msra.mxu1 %v2905_v4  ;;  %419 = vmatprep.mubr.bf16.mxu1 %v2783_v0 }
  0x5b   :  { %389 = vmatprep.subr.bf16.mxu1 %v2912_v8  ;;  %317 = vmatpush1.bf16.msra.mxu0 %v2928_v13 }
  0x5c   :  { %475 = vmatprep.subr.bf16.mxu0 %v2903_v3 }
  0x5e   :  { %390 = vmatpush1.bf16.msra.mxu1 %v2915_v9  ;;  %343 = vmatmul.mubr.bf16.vlgmr.msra.gmra.mrb[0].mxu0 %v2783_v0 }
  0x5f   :  { %391 = vmatprep.subr.bf16.mxu1 %v2918_v10  ;;  %476 = vmatpush1.bf16.msra.mxu0 %v2905_v4 }
  0x60   :  { %507 = vmatprep.mubr.bf16.mxu0 %v2783_v0  ;;  %477 = vmatprep.subr.bf16.mxu0 %v2912_v8 }
  0x62   :  { %392 = vmatpush1.bf16.msra.mxu1 %v2921_v11 }
  0x63   :  { %393 = vmatprep.subr.bf16.mxu1 %v2923_v12  ;;  %478 = vmatpush1.bf16.msra.mxu0 %v2915_v9 }
  0x64   :  { %479 = vmatprep.subr.bf16.mxu0 %v2918_v10 }
  0x66   :  { %394 = vmatpush1.bf16.msra.mxu1 %v2928_v13 }
  0x67   :  { %563 = vmatprep.subr.bf16.mxu1 %v2903_v3  ;;  %480 = vmatpush1.bf16.msra.mxu0 %v2921_v11 }
  0x68   :  { %481 = vmatprep.subr.bf16.mxu0 %v2923_v12 }
  0x6b   :  { %482 = vmatpush1.bf16.msra.mxu0 %v2928_v13 }
  0x6c   :  { %651 = vmatprep.subr.bf16.mxu0 %v2903_v3 }
 0x124   :  { %v167_v15 = vpop.f32.mrb[0].mxu1 }
 0x125   :  { %v169_v16 = vpop.f32.mrb[1].mxu1 }
 0x126   :  { %v171_v18 = vpop.f32.mrb[2].mxu1 }
 0x127   :  { %v173_v19 = vpop.f32.mrb[3].mxu1 }
 0x12c   :  { %v210_v23 = vpop.f32.mrb[4].mxu1 }
 0x12d   :  { %v250_v24 = vrot.slane %v210_v23, 6  ;;  %v258_v25 = vrot.slane %v210_v23, 2  ;;  %v212_v26 = vpop.f32.mrb[5].mxu1 }
 0x12e   :  { %v251_v28 = vrot.slane %v212_v26, 6  ;;  %v259_v29 = vrot.slane %v212_v26, 2  ;;  %v214_v30 = vpop.f32.mrb[6].mxu1 }
 0x12f   :  { %v254_v32 = vadd.f32 %v250_v24, %v171_v18  ;;  %v262_v33 = vadd.f32 %v258_v25, %v171_v18  ;;  %v221_v34 = vrot.slane %v214_v30, 6  ;;  %v240_v35 = vrot.slane %v214_v30, 2  ;;  %v216_v36 = vpop.f32.mrb[7].mxu1 }
 0x130   :  { %v255_v37 = vadd.f32 %v251_v28, %v173_v19  ;;  %v263_v38 = vadd.f32 %v259_v29, %v173_v19  ;;  %v222_v39 = vrot.slane %v216_v36, 6  ;;  %v241_v40 = vrot.slane %v216_v36, 2 }
 0x131   :  { %v225_v41 = vadd.f32 %v221_v34, %v167_v15  ;;  %v244_v42 = vadd.f32 %v240_v35, %v167_v15  ;;  %v2965_v43 = vadd.f32 %v254_v32, %v231_v27  ;;  %v2967_v44 = vadd.f32 %v262_v33, %v231_v27  ;;  %v344_v47 = vpop.f32.mrb[0].mxu0 }
 0x132   :  { %v226_v45 = vadd.f32 %v222_v39, %v169_v16  ;;  %v245_v46 = vadd.f32 %v241_v40, %v169_v16  ;;  %v2969_v48 = vadd.f32 %v255_v37, %v235_v31  ;;  %v2971_v49 = vadd.f32 %v263_v38, %v235_v31  ;;  %v346_v51 = vpop.f32.mrb[1].mxu0 }
 0x133   :  { %v2973_v50 = vadd.f32 %v231_v27, %v225_v41  ;;  %v2975_v52 = vadd.f32 %v244_v42, %v231_v27  ;;  %v348_v54 = vpop.f32.mrb[2].mxu0 }
 0x134   :  { %v2977_v53 = vadd.f32 %v235_v31, %v226_v45  ;;  %v2979_v55 = vadd.f32 %v245_v46, %v235_v31  ;;  %v349_v56 = vpop.f32.mrb[3].mxu0 }
 0x135   :  { %v351_v59 = vadd.f32 %v344_v47, %v2973_v50 }
 0x136   :  { %v352_v57 = vadd.f32 %v346_v51, %v2977_v53 }
 0x137   :  { %v2271_v60 = vmul.f32 -1.442695, %v351_v59 }
 0x138   :  { %2455 = vtanh.f32 %v352_v57  ;;  %v2272_v15 = vmul.f32 -1.442695, %v352_v57 }
 0x139   :  { %2457 = vpow2.f32 %v2271_v60 }
 0x142   :  { %v2456_v58 = vpop.eup %2455 }
 0x143   :  { %368 = vrot.lane.b32.xlu0 %v2456_v58, %s2781_s4  ;;  %v2458_v61 = vpop.eup %2457 }
 0x144   :  { %v359_v62 = vadd.f32 1.0, %v2458_v61 }
 0x146   :  { %2459 = vrcp.f32 %v359_v62 }
 0x150   :  { %v2460_v63 = vpop.eup %2459 }
 0x151   :  { %v366_v5 = vmul.f32 0.0, %v2460_v63 }
 0x1b5   :  { %v369_v1 = vpop.permute.xlu0 %368 }
 0x1b6   :  { %v371_v2 = vmul.f32 %v2460_v63, %v369_v1 }
 0x1b8   :  { %373 = vrot.lane.b32.xlu0 %v371_v2, %s2781_s4 }
 0x22a   :  { %v374_v6 = vpop.permute.xlu0 %373 }
 0x22b   :  { %v376_v7 = vadd.f32 %v374_v6, %v366_v5 }
 0x22d   :  { %2461 = vtanh.f32 %v376_v7  ;;  %v450_v40 = vrot.slane %v376_v7, 6 }
 0x22e   :  { %2463 = vpow2.f32 %v2272_v15 }
 0x237   :  { %v2462_v14 = vpop.eup %2461 }
 0x238   :  { %379 = vrot.lane.b32.xlu1 %v2462_v14, %s2781_s4  ;;  %v2464_v16 = vpop.eup %2463 }
 0x239   :  { %v360_v18 = vadd.f32 1.0, %v2464_v16 }
 0x23b   :  { %2465 = vrcp.f32 %v360_v18 }
 0x245   :  { %v2466_v19 = vpop.eup %2465 }
 0x2aa   :  { %v380_v21 = vpop.permute.xlu1 %379 }
 0x2ab   :  { %v2986_v23 = vmul.f32 %v2466_v19, %v380_v21 }
 0x2ad   :  { %v383_v24 = vpack.c.bf16 %v2986_v23, %v2986_v23 }
 0x2af   :  { %2273 = vmatmul.mubr.msk.bf16.vlgmr.msra.gmra.mrb[8].mxu1 %vm306_vm1, %v383_v24 }
 0x2b0   :  { %564 = vmatpush1.bf16.msra.mxu1 %v2905_v4  ;;  %595 = vmatprep.mubr.bf16.mxu1 %v2783_v0 }
 0x2b1   :  { %565 = vmatprep.subr.bf16.mxu1 %v2912_v8 }
 0x2b4   :  { %566 = vmatpush1.bf16.msra.mxu1 %v2915_v9 }
 0x2b5   :  { %567 = vmatprep.subr.bf16.mxu1 %v2918_v10 }
 0x2b8   :  { %568 = vmatpush1.bf16.msra.mxu1 %v2921_v11 }
 0x2b9   :  { %569 = vmatprep.subr.bf16.mxu1 %v2923_v12 }
 0x2bc   :  { %570 = vmatpush1.bf16.msra.mxu1 %v2928_v13 }
 0x2bd   :  { %731 = vmatprep.subr.bf16.mxu1 %v2903_v3 }
 0x382   :  { %v421_v25 = vpop.f32.mrb[8].mxu1 }
 0x383   :  { %v423_v26 = vpop.f32.mrb[9].mxu1  ;;  %v430_v32 = vrot.slane %v421_v25, 6 }
 0x384   :  { %v431_v27 = vrot.slane %v423_v26, 6  ;;  %v425_v28 = vpop.f32.mrb[10].mxu1 }
 0x385   :  { %v426_v29 = vpop.f32.mrb[11].mxu1  ;;  %v434_v33 = vadd.f32 %v430_v32, %v2975_v52 }
 0x386   :  { %v435_v30 = vadd.f32 %v431_v27, %v2979_v55 }
 0x387   :  { %v2274_v34 = vmul.f32 -1.442695, %v434_v33 }
 0x388   :  { %2467 = vtanh.f32 %v435_v30  ;;  %v2275_v47 = vmul.f32 -1.442695, %v435_v30 }
 0x389   :  { %2469 = vpow2.f32 %v2274_v34 }
 0x392   :  { %v2468_v31 = vpop.eup %2467 }
 0x393   :  { %454 = vrot.lane.b32.xlu1 %v2468_v31, %s2781_s4  ;;  %v2470_v35 = vpop.eup %2469 }
 0x394   :  { %v442_v36 = vadd.f32 1.0, %v2470_v35 }
 0x396   :  { %2471 = vrcp.f32 %v442_v36 }
 0x3a0   :  { %v2472_v37 = vpop.eup %2471 }
 0x3a1   :  { %v452_v41 = vmul.f32 %v2472_v37, %v450_v40 }
 0x405   :  { %v455_v38 = vpop.permute.xlu1 %454 }
 0x406   :  { %v457_v39 = vmul.f32 %v2472_v37, %v455_v38 }
 0x408   :  { %459 = vrot.lane.b32.xlu0 %v457_v39, %s2781_s4 }
 0x47a   :  { %v460_v42 = vpop.permute.xlu0 %459 }
 0x47b   :  { %v462_v45 = vadd.f32 %v460_v42, %v452_v41 }
 0x47d   :  { %2473 = vtanh.f32 %v462_v45  ;;  %v538_v25 = vrot.slane %v462_v45, 6 }
 0x47e   :  { %2475 = vpow2.f32 %v2275_v47 }
 0x487   :  { %v2474_v46 = vpop.eup %2473 }
 0x488   :  { %465 = vrot.lane.b32.xlu1 %v2474_v46, %s2781_s4  ;;  %v2476_v51 = vpop.eup %2475 }
 0x489   :  { %v443_v54 = vadd.f32 1.0, %v2476_v51 }
 0x48b   :  { %2477 = vrcp.f32 %v443_v54 }
 0x495   :  { %v2478_v56 = vpop.eup %2477 }
 0x4fa   :  { %v466_v57 = vpop.permute.xlu1 %465 }
 0x4fb   :  { %v3005_v58 = vmul.f32 %v2478_v56, %v466_v57 }
 0x4fd   :  { %v469_v59 = vpack.c.bf16 %v3005_v58, %v3005_v58 }
 0x4ff   :  { %v471_v60 = vrot.slane %v469_v59, 1 }
 0x501   :  { %2276 = vmatmul.mubr.msk.bf16.vlgmr.msra.gmra.mrb[4].mxu0 %vm306_vm1, %v471_v60 }
 0x502   :  { %652 = vmatpush1.bf16.msra.mxu0 %v2905_v4  ;;  %683 = vmatprep.mubr.bf16.mxu0 %v2783_v0 }
 0x503   :  { %653 = vmatprep.subr.bf16.mxu0 %v2912_v8 }
 0x506   :  { %654 = vmatpush1.bf16.msra.mxu0 %v2915_v9 }
 0x507   :  { %655 = vmatprep.subr.bf16.mxu0 %v2918_v10 }
 0x50a   :  { %656 = vmatpush1.bf16.msra.mxu0 %v2921_v11 }
 0x50b   :  { %657 = vmatprep.subr.bf16.mxu0 %v2923_v12 }
 0x50e   :  { %658 = vmatpush1.bf16.msra.mxu0 %v2928_v13 }
 0x50f   :  { %819 = vmatprep.subr.bf16.mxu0 %v2903_v3 }
 0x5d4   :  { %v509_v61 = vpop.f32.mrb[4].mxu0 }
 0x5d5   :  { %v511_v62 = vpop.f32.mrb[5].mxu0  ;;  %v518_v7 = vrot.slane %v509_v61, 4 }
 0x5d6   :  { %v519_v63 = vrot.slane %v511_v62, 4  ;;  %v513_v1 = vpop.f32.mrb[6].mxu0 }
 0x5d7   :  { %v514_v2 = vpop.f32.mrb[7].mxu0  ;;  %v522_v14 = vadd.f32 %v518_v7, %v2973_v50 }
 0x5d8   :  { %v523_v5 = vadd.f32 %v519_v63, %v2977_v53 }
 0x5d9   :  { %v2277_v15 = vmul.f32 -1.442695, %v522_v14 }
 0x5da   :  { %2479 = vtanh.f32 %v523_v5  ;;  %v2278_v29 = vmul.f32 -1.442695, %v523_v5 }
 0x5db   :  { %2481 = vpow2.f32 %v2277_v15 }
 0x5e4   :  { %v2480_v6 = vpop.eup %2479 }
 0x5e5   :  { %542 = vrot.lane.b32.xlu0 %v2480_v6, %s2781_s4  ;;  %v2482_v16 = vpop.eup %2481 }
 0x5e6   :  { %v530_v18 = vadd.f32 1.0, %v2482_v16 }
 0x5e8   :  { %2483 = vrcp.f32 %v530_v18 }
 0x5f2   :  { %v2484_v19 = vpop.eup %2483 }
 0x5f3   :  { %v540_v26 = vmul.f32 %v2484_v19, %v538_v25 }
 0x657   :  { %v543_v21 = vpop.permute.xlu0 %542 }
 0x658   :  { %v545_v24 = vmul.f32 %v2484_v19, %v543_v21 }
 0x65a   :  { %547 = vrot.lane.b32.xlu1 %v545_v24, %s2781_s4 }
 0x6cc   :  { %v548_v53 = vpop.permute.xlu1 %547 }
 0x6cd   :  { %v550_v27 = vadd.f32 %v548_v53, %v540_v26 }
 0x6cf   :  { %2485 = vtanh.f32 %v550_v27  ;;  %v626_v59 = vrot.slane %v550_v27, 6 }
 0x6d0   :  { %2487 = vpow2.f32 %v2278_v29 }
 0x6d9   :  { %v2486_v28 = vpop.eup %2485 }
 0x6da   :  { %553 = vrot.lane.b32.xlu0 %v2486_v28, %s2781_s4  ;;  %v2488_v50 = vpop.eup %2487 }
 0x6db   :  { %v531_v30 = vadd.f32 1.0, %v2488_v50 }
 0x6dd   :  { %2489 = vrcp.f32 %v531_v30 }
 0x6e7   :  { %v2490_v31 = vpop.eup %2489 }
 0x74c   :  { %v554_v32 = vpop.permute.xlu0 %553 }
 0x74d   :  { %v3024_v33 = vmul.f32 %v2490_v31, %v554_v32 }
 0x74f   :  { %v557_v34 = vpack.c.bf16 %v3024_v33, %v3024_v33 }
 0x751   :  { %v559_v35 = vrot.slane %v557_v34, 2 }
 0x753   :  { %2279 = vmatmul.mubr.msk.bf16.vlgmr.msra.gmra.mrb[12].mxu1 %vm306_vm1, %v559_v35 }
 0x754   :  { %732 = vmatpush1.bf16.msra.mxu1 %v2905_v4  ;;  %763 = vmatprep.mubr.bf16.mxu1 %v2783_v0 }
 0x755   :  { %733 = vmatprep.subr.bf16.mxu1 %v2912_v8 }
 0x758   :  { %734 = vmatpush1.bf16.msra.mxu1 %v2915_v9 }
 0x759   :  { %735 = vmatprep.subr.bf16.mxu1 %v2918_v10 }
 0x75c   :  { %736 = vmatpush1.bf16.msra.mxu1 %v2921_v11 }
 0x75d   :  { %737 = vmatprep.subr.bf16.mxu1 %v2923_v12 }
 0x760   :  { %738 = vmatpush1.bf16.msra.mxu1 %v2928_v13 }
 0x761   :  { %907 = vmatprep.subr.bf16.mxu1 %v2903_v3 }
 0x826   :  { %v597_v36 = vpop.f32.mrb[12].mxu1 }
 0x827   :  { %v599_v37 = vpop.f32.mrb[13].mxu1  ;;  %v606_v45 = vrot.slane %v597_v36, 2 }
 0x828   :  { %v607_v38 = vrot.slane %v599_v37, 2  ;;  %v601_v39 = vpop.f32.mrb[14].mxu1 }
 0x829   :  { %v602_v40 = vpop.f32.mrb[15].mxu1  ;;  %v610_v46 = vadd.f32 %v606_v45, %v2975_v52 }
 0x82a   :  { %v611_v41 = vadd.f32 %v607_v38, %v2979_v55 }
 0x82b   :  { %v2280_v47 = vmul.f32 -1.442695, %v610_v46 }
 0x82c   :  { %2491 = vtanh.f32 %v611_v41  ;;  %v2281_v63 = vmul.f32 -1.442695, %v611_v41 }
 0x82d   :  { %2493 = vpow2.f32 %v2280_v47 }
 0x836   :  { %v2492_v42 = vpop.eup %2491 }
 0x837   :  { %630 = vrot.lane.b32.xlu1 %v2492_v42, %s2781_s4  ;;  %v2494_v51 = vpop.eup %2493 }
 0x838   :  { %v618_v54 = vadd.f32 1.0, %v2494_v51 }
 0x83a   :  { %2495 = vrcp.f32 %v618_v54 }
 0x844   :  { %v2496_v3 = vpop.eup %2495 }
 0x845   :  { %v628_v60 = vmul.f32 %v2496_v3, %v626_v59 }
 0x8a9   :  { %v631_v56 = vpop.permute.xlu1 %630 }
 0x8aa   :  { %v633_v57 = vmul.f32 %v2496_v3, %v631_v56 }
 0x8ac   :  { %635 = vrot.lane.b32.xlu0 %v633_v57, %s2781_s4 }
 0x91e   :  { %v636_v55 = vpop.permute.xlu0 %635 }
 0x91f   :  { %v638_v61 = vadd.f32 %v636_v55, %v628_v60 }
 0x921   :  { %2497 = vtanh.f32 %v638_v61  ;;  %v708_v30 = vrot.slane %v638_v61, 6 }
 0x922   :  { %2499 = vpow2.f32 %v2281_v63 }
 0x92b   :  { %v2498_v62 = vpop.eup %2497 }
 0x92c   :  { %641 = vrot.lane.b32.xlu1 %v2498_v62, %s2781_s4  ;;  %v2500_v52 = vpop.eup %2499 }
 0x92d   :  { %v619_v1 = vadd.f32 1.0, %v2500_v52 }
 0x92f   :  { %2501 = vrcp.f32 %v619_v1 }
 0x939   :  { %v2502_v2 = vpop.eup %2501 }
 0x99e   :  { %v642_v5 = vpop.permute.xlu1 %641 }
 0x99f   :  { %v3043_v6 = vmul.f32 %v2502_v2, %v642_v5 }
 0x9a1   :  { %v645_v7 = vpack.c.bf16 %v3043_v6, %v3043_v6 }
 0x9a3   :  { %v647_v14 = vrot.slane %v645_v7, 3  ;;  %v1011_v7 = vrot.slane %v3024_v33, 2 }
 0x9a5   :  { %2282 = vmatmul.mubr.msk.bf16.vlgmr.msra.gmra.mrb[8].mxu0 %vm306_vm1, %v647_v14  ;;  %v1007_v14 = vrot.slane %v3043_v6, 6 }
 0x9a6   :  { %820 = vmatpush1.bf16.msra.mxu0 %v2905_v4  ;;  %851 = vmatprep.mubr.bf16.mxu0 %v2783_v0 }
 0x9a7   :  { %821 = vmatprep.subr.bf16.mxu0 %v2912_v8 }
 0x9aa   :  { %822 = vmatpush1.bf16.msra.mxu0 %v2915_v9 }
 0x9ab   :  { %823 = vmatprep.subr.bf16.mxu0 %v2918_v10 }
 0x9ae   :  { %824 = vmatpush1.bf16.msra.mxu0 %v2921_v11 }
 0x9af   :  { %825 = vmatprep.subr.bf16.mxu0 %v2923_v12 }
 0x9b2   :  { %826 = vmatpush1.bf16.msra.mxu0 %v2928_v13 }
 0xa78   :  { %v685_v15 = vpop.f32.mrb[8].mxu0 }
 0xa79   :  { %v687_v16 = vpop.f32.mrb[9].mxu0  ;;  %v692_v25 = vadd.f32 %v685_v15, %v2965_v43 }
 0xa7a   :  { %v693_v18 = vadd.f32 %v687_v16, %v2969_v48  ;;  %v689_v19 = vpop.f32.mrb[10].mxu0 }
 0xa7b   :  { %v690_v21 = vpop.f32.mrb[11].mxu0  ;;  %v2283_v26 = vmul.f32 -1.442695, %v692_v25 }
 0xa7c   :  { %2503 = vtanh.f32 %v693_v18  ;;  %v2284_v36 = vmul.f32 -1.442695, %v693_v18 }
 0xa7d   :  { %2505 = vpow2.f32 %v2283_v26 }
 0xa86   :  { %v2504_v24 = vpop.eup %2503 }
 0xa87   :  { %712 = vrot.lane.b32.xlu0 %v2504_v24, %s2781_s4  ;;  %v2506_v53 = vpop.eup %2505 }
 0xa88   :  { %v700_v27 = vadd.f32 1.0, %v2506_v53 }
 0xa8a   :  { %2507 = vrcp.f32 %v700_v27 }
 0xa94   :  { %v2508_v28 = vpop.eup %2507 }
 0xa95   :  { %v710_v31 = vmul.f32 %v2508_v28, %v708_v30 }
 0xaf9   :  { %v713_v29 = vpop.permute.xlu0 %712 }
 0xafa   :  { %v715_v50 = vmul.f32 %v2508_v28, %v713_v29 }
 0xafc   :  { %717 = vrot.lane.b32.xlu1 %v715_v50, %s2781_s4 }
 0xb6e   :  { %v718_v32 = vpop.permute.xlu1 %717 }
 0xb6f   :  { %v720_v34 = vadd.f32 %v718_v32, %v710_v31 }
 0xb71   :  { %2509 = vtanh.f32 %v720_v34  ;;  %v794_v59 = vrot.slane %v720_v34, 6 }
 0xb72   :  { %2511 = vpow2.f32 %v2284_v36 }
 0xb7b   :  { %v2510_v35 = vpop.eup %2509 }
 0xb7c   :  { %723 = vrot.lane.b32.xlu0 %v2510_v35, %s2781_s4  ;;  %v2512_v37 = vpop.eup %2511 }
 0xb7d   :  { %v701_v38 = vadd.f32 1.0, %v2512_v37 }
 0xb7f   :  { %2513 = vrcp.f32 %v701_v38 }
 0xb89   :  { %v2514_v39 = vpop.eup %2513 }
 0xbee   :  { %v724_v40 = vpop.permute.xlu0 %723 }
 0xbef   :  { %v3061_v41 = vmul.f32 %v2514_v39, %v724_v40 }
 0xbf1   :  { %v727_v42 = vpack.c.bf16 %v3061_v41, %v3061_v41  ;;  %v1009_v16 = vsel %vm992_vm2, %v3061_v41, %v1007_v14  ;;  %v2415_v14 = vld [vmem:[#allocation7] ss:$16 sps:$4 sm:$0xff]  }
 0xbf3   :  { %2285 = vmatmul.mubr.msk.bf16.vlgmr.msra.gmra.mrb[16].mxu1 %vm306_vm1, %v727_v42 }
 0xbf4   :  { %908 = vmatpush1.bf16.msra.mxu1 %v2905_v4  ;;  %939 = vmatprep.mubr.bf16.mxu1 %v2783_v0 }
 0xbf5   :  { %909 = vmatprep.subr.bf16.mxu1 %v2912_v8 }
 0xbf8   :  { %910 = vmatpush1.bf16.msra.mxu1 %v2915_v9 }
 0xbf9   :  { %911 = vmatprep.subr.bf16.mxu1 %v2918_v10 }
 0xbfc   :  { %912 = vmatpush1.bf16.msra.mxu1 %v2921_v11 }
 0xbfd   :  { %913 = vmatprep.subr.bf16.mxu1 %v2923_v12 }
 0xc00   :  { %914 = vmatpush1.bf16.msra.mxu1 %v2928_v13 }
 0xcc6   :  { %v765_v45 = vpop.f32.mrb[16].mxu1 }
 0xcc7   :  { %v767_v46 = vpop.f32.mrb[17].mxu1  ;;  %v774_v8 = vrot.slane %v765_v45, 6 }
 0xcc8   :  { %v775_v47 = vrot.slane %v767_v46, 6  ;;  %v769_v51 = vpop.f32.mrb[18].mxu1 }
 0xcc9   :  { %v770_v54 = vpop.f32.mrb[19].mxu1  ;;  %v778_v9 = vadd.f32 %v774_v8, %v2967_v44 }
 0xcca   :  { %v779_v4 = vadd.f32 %v775_v47, %v2971_v49 }
 0xccb   :  { %v2286_v10 = vmul.f32 -1.442695, %v778_v9 }
 0xccc   :  { %2515 = vtanh.f32 %v779_v4  ;;  %v2287_v63 = vmul.f32 -1.442695, %v779_v4  ;;  %v1015_v4 = vrot.slane %v3005_v58, 6 }
 0xccd   :  { %2517 = vpow2.f32 %v2286_v10 }
 0xcd6   :  { %v2516_v3 = vpop.eup %2515 }
 0xcd7   :  { %798 = vrot.lane.b32.xlu1 %v2516_v3, %s2781_s4  ;;  %v2518_v11 = vpop.eup %2517 }
 0xcd8   :  { %v786_v12 = vadd.f32 1.0, %v2518_v11 }
 0xcda   :  { %2519 = vrcp.f32 %v786_v12 }
 0xce4   :  { %v2520_v13 = vpop.eup %2519 }
 0xce5   :  { %v796_v60 = vmul.f32 %v2520_v13, %v794_v59 }
 0xd49   :  { %v799_v56 = vpop.permute.xlu1 %798 }
 0xd4a   :  { %v801_v57 = vmul.f32 %v2520_v13, %v799_v56 }
 0xd4c   :  { %803 = vrot.lane.b32.xlu0 %v801_v57, %s2781_s4 }
 0xdbe   :  { %v804_v55 = vpop.permute.xlu0 %803 }
 0xdbf   :  { %v806_v61 = vadd.f32 %v804_v55, %v796_v60 }
 0xdc1   :  { %2521 = vtanh.f32 %v806_v61  ;;  %v882_v39 = vrot.slane %v806_v61, 6 }
 0xdc2   :  { %2523 = vpow2.f32 %v2287_v63 }
 0xdcb   :  { %v2522_v62 = vpop.eup %2521 }
 0xdcc   :  { %809 = vrot.lane.b32.xlu1 %v2522_v62, %s2781_s4  ;;  %v2524_v52 = vpop.eup %2523 }
 0xdcd   :  { %v787_v1 = vadd.f32 1.0, %v2524_v52 }
 0xdcf   :  { %2525 = vrcp.f32 %v787_v1 }
 0xdd9   :  { %v2526_v2 = vpop.eup %2525 }
 0xe3e   :  { %v810_v5 = vpop.permute.xlu1 %809 }
 0xe3f   :  { %v3081_v15 = vmul.f32 %v2526_v2, %v810_v5 }
 0xe41   :  { %v813_v18 = vpack.c.bf16 %v3081_v15, %v3081_v15  ;;  %v1013_v19 = vsel %vm992_vm2, %v3081_v15, %v1011_v7 }
 0xe42   :  { %v1028_v21 = vsel %vm1022_vm3, %v1009_v16, %v1013_v19  ;;  %v2417_v16 = vld [vmem:[#allocation7 + $0x4] ss:$16 sps:$4 sm:$0xff]  }
 0xe43   :  { %v815_v24 = vrot.slane %v813_v18, 1  ;;  %v2420_v18 = vld [vmem:[#allocation7 + $0xc] ss:$16 sps:$4 sm:$0xff]   ;;  %v2423_v19 = vld [vmem:[#allocation7 + $0x24] ss:$16 sps:$4 sm:$0xff]   ;;  %1140 = vmatprep.subr.bf16.mxu0 %v2417_v16 }
 0xe44   :  { %1183 = vmatprep.subr.bf16.mxu1 %v2420_v18 }
 0xe45   :  { %2288 = vmatmul.mubr.msk.bf16.vlgmr.msra.gmra.mrb[12].mxu0 %vm306_vm1, %v815_v24  ;;  %v2424_v24 = vld [vmem:[#allocation7 + $0x28] ss:$16 sps:$4 sm:$0xff]  }
 0xe46   :  { %1172 = vmatprep.mubr.bf16.mxu0 %v2783_v0  ;;  %1141 = vmatpush1.bf16.msra.mxu0 %v2415_v14 }
 0xe47   :  { %1142 = vmatprep.subr.bf16.mxu0 %v2423_v19 }
 0xf18   :  { %v853_v25 = vpop.f32.mrb[12].mxu0 }
 0xf19   :  { %v855_v26 = vpop.f32.mrb[13].mxu0  ;;  %v862_v30 = vrot.slane %v853_v25, 4 }
 0xf1a   :  { %v863_v53 = vrot.slane %v855_v26, 4  ;;  %v857_v27 = vpop.f32.mrb[14].mxu0 }
 0xf1b   :  { %v858_v28 = vpop.f32.mrb[15].mxu0  ;;  %v866_v31 = vadd.f32 %v862_v30, %v2965_v43  ;;  %v2430_v30 = vld [vmem:[#allocation7 + $0x48] ss:$16 sps:$4 sm:$0xff]  }
 0xf1c   :  { %v867_v29 = vadd.f32 %v863_v53, %v2969_v48  ;;  %v2429_v28 = vld [vmem:[#allocation7 + $0x44] ss:$16 sps:$4 sm:$0xff]  }
 0xf1d   :  { %v2289_v32 = vmul.f32 -1.442695, %v866_v31  ;;  %v2435_v31 = vld [vmem:[#allocation7 + $0x64] ss:$16 sps:$4 sm:$0xff]  }
 0xf1e   :  { %2527 = vtanh.f32 %v867_v29  ;;  %v2290_v46 = vmul.f32 -1.442695, %v867_v29  ;;  %v2427_v29 = vld [vmem:[#allocation7 + $0x40] ss:$16 sps:$4 sm:$0xff]  }
 0xf1f   :  { %2529 = vpow2.f32 %v2289_v32  ;;  %v2433_v32 = vld [vmem:[#allocation7 + $0x60] ss:$16 sps:$4 sm:$0xff]  }
 0xf28   :  { %v2528_v50 = vpop.eup %2527 }
 0xf29   :  { %886 = vrot.lane.b32.xlu0 %v2528_v50, %s2781_s4  ;;  %v2530_v34 = vpop.eup %2529  ;;  %v2432_v50 = vld [vmem:[#allocation7 + $0x4c] ss:$16 sps:$4 sm:$0xff]  }
 0xf2a   :  { %v874_v35 = vadd.f32 1.0, %v2530_v34  ;;  %v2438_v34 = vld [vmem:[#allocation7 + $0x6c] ss:$16 sps:$4 sm:$0xff]  }
 0xf2c   :  { %2531 = vrcp.f32 %v874_v35  ;;  %v2436_v35 = vld [vmem:[#allocation7 + $0x68] ss:$16 sps:$4 sm:$0xff]  }
 0xf36   :  { %v2532_v36 = vpop.eup %2531 }
 0xf37   :  { %v884_v40 = vmul.f32 %v2532_v36, %v882_v39 }
 0xf9b   :  { %v887_v37 = vpop.permute.xlu0 %886 }
 0xf9c   :  { %v889_v38 = vmul.f32 %v2532_v36, %v887_v37  ;;  %v3116_v36 = vld [vmem:[%s3429_s5 + $0x4] ss:$8 sps:$4 sm:$0xff]  }
 0xf9e   :  { %891 = vrot.lane.b32.xlu1 %v889_v38, %s2781_s4 }
0x1010   :  { %v892_v48 = vpop.permute.xlu1 %891 }
0x1011   :  { %v894_v42 = vadd.f32 %v892_v48, %v884_v40 }
0x1013   :  { %2533 = vtanh.f32 %v894_v42  ;;  %v970_v25 = vrot.slane %v894_v42, 6 }
0x1014   :  { %2535 = vpow2.f32 %v2290_v46 }
0x101d   :  { %v2534_v45 = vpop.eup %2533 }
0x101e   :  { %897 = vrot.lane.b32.xlu0 %v2534_v45, %s2781_s4  ;;  %v2536_v43 = vpop.eup %2535  ;;  %v1019_v45 = vrot.slane %v2986_v23, 2 }
0x101f   :  { %v875_v47 = vadd.f32 1.0, %v2536_v43 }
0x1021   :  { %2537 = vrcp.f32 %v875_v47  ;;  %v999_v47 = vrot.slane %v3081_v15, 6 }
0x102b   :  { %v2538_v51 = vpop.eup %2537 }
0x1090   :  { %v898_v54 = vpop.permute.xlu0 %897 }
0x1091   :  { %v3098_v3 = vmul.f32 %v2538_v51, %v898_v54  ;;  %v1003_v51 = vrot.slane %v3061_v41, 2 }
0x1093   :  { %v901_v8 = vpack.c.bf16 %v3098_v3, %v3098_v3  ;;  %v1017_v9 = vsel %vm992_vm2, %v3098_v3, %v1015_v4  ;;  %v995_v46 = vrot.slane %v3098_v3, 2  ;;  %v1001_v3 = vsel %vm992_vm2, %v3024_v33, %v999_v47  ;;  %v3155_v33 = vld [vmem:[%s3429_s5 + $0x10] ss:$8 sps:$4 sm:$0xff]  }
0x1094   :  { %v3105_v10 = vsel %vm1024_vm4, %v1028_v21, %v1017_v9  ;;  %v2426_v21 = vld [vmem:[#allocation7 + $0x2c] ss:$16 sps:$4 sm:$0xff]   ;;  %v1005_v41 = vsel %vm992_vm2, %v3043_v6, %v1003_v51 }
0x1095   :  { %v903_v11 = vrot.slane %v901_v8, 2  ;;  %v997_v9 = vsel %vm992_vm2, %v3005_v58, %v995_v46  ;;  %v3162_v6 = vld [vmem:[%s3429_s5 + $0x24] ss:$8 sps:$4 sm:$0xff]  }
0x1097   :  { %2291 = vmatmul.mubr.msk.bf16.vlgmr.msra.gmra.mrb[20].mxu1 %vm306_vm1, %v903_v11 }
0x1098   :  { %1215 = vmatprep.mubr.bf16.mxu1 %v2783_v0 }
0x116a   :  { %v941_v12 = vpop.f32.mrb[20].mxu1 }
0x116b   :  { %v943_v13 = vpop.f32.mrb[21].mxu1  ;;  %v950_v61 = vrot.slane %v941_v12, 2 }
0x116c   :  { %v951_v56 = vrot.slane %v943_v13, 2  ;;  %v945_v57 = vpop.f32.mrb[22].mxu1 }
0x116d   :  { %v946_v59 = vpop.f32.mrb[23].mxu1  ;;  %v954_v62 = vadd.f32 %v950_v61, %v2967_v44  ;;  %v2421_v44 = vld [vmem:[#allocation7 + $0x20] ss:$16 sps:$4 sm:$0xff]   ;;  %v3177_v57 = vld [vmem:[%s3429_s5 + $0x34] ss:$8 sps:$4 sm:$0xff]  }
0x116e   :  { %v955_v60 = vadd.f32 %v951_v56, %v2971_v49  ;;  %v2418_v49 = vld [vmem:[#allocation7 + $0x8] ss:$16 sps:$4 sm:$0xff]   ;;  %1143 = vmatpush1.bf16.msra.mxu0 %v2421_v44 }
0x116f   :  { %v2292_v63 = vmul.f32 -1.442695, %v954_v62  ;;  %1184 = vmatpush1.bf16.msra.mxu1 %v2418_v49  ;;  %1144 = vmatprep.subr.bf16.mxu0 %v2429_v28  ;;  %v3171_v56 = vld [vmem:[%s3429_s5 + $0x20] ss:$8 sps:$4 sm:$0xff]   ;;  %v3185_v59 = vld [vmem:[%s3429_s5 + $0x30] ss:$8 sps:$4 sm:$0xff]  }
0x1170   :  { %2539 = vtanh.f32 %v955_v60  ;;  %1185 = vmatprep.subr.bf16.mxu1 %v2426_v21  ;;  %v2293_v38 = vmul.f32 -1.442695, %v955_v60  ;;  %v1056_v60 = vld [vmem:[%s3430_s6] sm:$0x3] }
0x1171   :  { %2541 = vpow2.f32 %v2292_v63  ;;  %v1242_v49 = vrot.slane %v1056_v60, %v234_v22 }
0x1172   :  { %1145 = vmatpush1.bf16.msra.mxu0 %v2427_v29 }
0x1173   :  { %1186 = vmatpush1.bf16.msra.mxu1 %v2424_v24  ;;  %1146 = vmatprep.subr.bf16.mxu0 %v2435_v31 }
0x1174   :  { %1187 = vmatprep.subr.bf16.mxu1 %v2432_v50 }
0x1176   :  { %1147 = vmatpush1.bf16.msra.mxu0 %v2433_v32 }
0x1177   :  { %1188 = vmatpush1.bf16.msra.mxu1 %v2430_v30  ;;  %1313 = vmatprep.subr.bf16.mxu0 %v3116_v36 }
0x1178   :  { %1189 = vmatprep.subr.bf16.mxu1 %v2438_v34 }
0x117a   :  { %v2540_v55 = vpop.eup %2539 }
0x117b   :  { %974 = vrot.lane.b32.xlu1 %v2540_v55, %s2781_s4  ;;  %v2542_v52 = vpop.eup %2541  ;;  %1190 = vmatpush1.bf16.msra.mxu1 %v2436_v35 }
0x117c   :  { %v962_v1 = vadd.f32 1.0, %v2542_v52  ;;  %1390 = vmatprep.subr.bf16.mxu1 %v3116_v36 }
0x117e   :  { %2543 = vrcp.f32 %v962_v1 }
0x1188   :  { %v2544_v2 = vpop.eup %2543 }
0x1189   :  { %v972_v26 = vmul.f32 %v2544_v2, %v970_v25 }
0x11ed   :  { %v975_v5 = vpop.permute.xlu1 %974 }
0x11ee   :  { %v977_v7 = vmul.f32 %v2544_v2, %v975_v5  ;;  %v1238_v2 = vrot.slane %v1056_v60, %v230_v20 }
0x11f0   :  { %979 = vrot.lane.b32.xlu0 %v977_v7, %s2781_s4 }
0x1262   :  { %v980_v53 = vpop.permute.xlu0 %979 }
0x1263   :  { %v982_v27 = vadd.f32 %v980_v53, %v972_v26 }
0x1265   :  { %2545 = vtanh.f32 %v982_v27 }
0x1266   :  { %2547 = vpow2.f32 %v2293_v38 }
0x126f   :  { %v2546_v37 = vpop.eup %2545 }
0x1270   :  { %985 = vrot.lane.b32.xlu1 %v2546_v37, %s2781_s4  ;;  %v2548_v39 = vpop.eup %2547 }
0x1271   :  { %v963_v40 = vadd.f32 1.0, %v2548_v39 }
0x1273   :  { %2549 = vrcp.f32 %v963_v40 }
0x127d   :  { %v2550_v48 = vpop.eup %2549 }
0x12e2   :  { %v986_v42 = vpop.permute.xlu1 %985 }
0x12e3   :  { %v988_v43 = vmul.f32 %v2550_v48, %v986_v42 }
0x12e5   :  { %v990_v54 = vrot.slane %v988_v43, 6  ;;  %v1021_v4 = vsel %vm992_vm2, %v988_v43, %v1019_v45 }
0x12e6   :  { %v1030_v8 = vsel %vm1026_vm5, %v3105_v10, %v1021_v4  ;;  %v3142_v10 = vld [vmem:[%s3429_s5] ss:$8 sps:$4 sm:$0xff]  }
0x12e7   :  { %v993_v11 = vsel %vm992_vm2, %v2986_v23, %v990_v54  ;;  %v3147_v23 = vld [vmem:[%s3429_s5 + $0x14] ss:$8 sps:$4 sm:$0xff]  }
0x12e8   :  { %v1023_v12 = vsel %vm1022_vm3, %v993_v11, %v997_v9 }
0x12e9   :  { %v1025_v15 = vsel %vm1024_vm4, %v1023_v12, %v1001_v3 }
0x12ea   :  { %v1027_v13 = vsel %vm1026_vm5, %v1025_v15, %v1005_v41 }
0x12eb   :  { %v1031_v58 = vpack.c.bf16 %v1030_v8, %v1027_v13 }
0x12ed   :  { %2310 = vmatmul.mubr.msk.bf16.vlgmr.msra.gmra.mrb[16].mxu0 %vm306_vm1, %v1031_v58  ;;  %2311 = vmatmul.mubr.msk.bf16.vlgmr.msra.gmra.mrb[24].mxu1 %vm306_vm1, %v1031_v58 }
0x12ee   :  { %1314 = vmatpush1.bf16.msra.mxu0 %v3142_v10  ;;  %1345 = vmatprep.mubr.bf16.mxu0 %v2783_v0 }
0x12ef   :  { %1315 = vmatprep.subr.bf16.mxu0 %v3147_v23  ;;  %1391 = vmatpush1.bf16.msra.mxu1 %v3142_v10 }
0x12f0   :  { %1392 = vmatprep.subr.bf16.mxu1 %v3147_v23  ;;  %1422 = vmatprep.mubr.bf16.mxu1 %v2783_v0 }
0x12f2   :  { %1316 = vmatpush1.bf16.msra.mxu0 %v3155_v33 }
0x12f3   :  { %1317 = vmatprep.subr.bf16.mxu0 %v3162_v6  ;;  %1393 = vmatpush1.bf16.msra.mxu1 %v3155_v33 }
0x12f4   :  { %1394 = vmatprep.subr.bf16.mxu1 %v3162_v6 }
0x12f6   :  { %1318 = vmatpush1.bf16.msra.mxu0 %v3171_v56 }
0x12f7   :  { %1319 = vmatprep.subr.bf16.mxu0 %v3177_v57  ;;  %1395 = vmatpush1.bf16.msra.mxu1 %v3171_v56 }
0x12f8   :  { %1396 = vmatprep.subr.bf16.mxu1 %v3177_v57 }
0x12fa   :  { %1320 = vmatpush1.bf16.msra.mxu0 %v3185_v59 }
0x12fb   :  { %1397 = vmatpush1.bf16.msra.mxu1 %v3185_v59  ;;  %1478 = vmatprep.subr.bf16.mxu0 %v3116_v36 }
0x12fc   :  { %1566 = vmatprep.subr.bf16.mxu1 %v3116_v36 }
0x12fd   :  { %1346 = vmatmul.mubr.bf16.vlgmr.msra.gmra.mrb[20].mxu0 %v2783_v0 }
0x12fe   :  { %1479 = vmatpush1.bf16.msra.mxu0 %v3142_v10  ;;  %1510 = vmatprep.mubr.bf16.mxu0 %v2783_v0 }
0x12ff   :  { %1480 = vmatprep.subr.bf16.mxu0 %v3147_v23 }
0x1302   :  { %1481 = vmatpush1.bf16.msra.mxu0 %v3155_v33 }
0x1303   :  { %1482 = vmatprep.subr.bf16.mxu0 %v3162_v6 }
0x1306   :  { %1483 = vmatpush1.bf16.msra.mxu0 %v3171_v56 }
0x1307   :  { %1484 = vmatprep.subr.bf16.mxu0 %v3177_v57 }
0x130a   :  { %1485 = vmatpush1.bf16.msra.mxu0 %v3185_v59 }
0x130b   :  { %1654 = vmatprep.subr.bf16.mxu0 %v3116_v36 }
0x13c0   :  { %v1174_v55 = vpop.f32.mrb[16].mxu0  ;;  %v1217_v61 = vpop.f32.mrb[24].mxu1 }
0x13c1   :  { %v1257_v62 = vrot.slane %v1217_v61, 6  ;;  %v1265_v63 = vrot.slane %v1217_v61, 2  ;;  %v1176_v52 = vpop.f32.mrb[17].mxu0  ;;  %v1219_v1 = vpop.f32.mrb[25].mxu1 }
0x13c2   :  { %v1258_v5 = vrot.slane %v1219_v1, 6  ;;  %v1266_v7 = vrot.slane %v1219_v1, 2  ;;  %v1178_v14 = vpop.f32.mrb[18].mxu0  ;;  %v1221_v16 = vpop.f32.mrb[26].mxu1 }
0x13c3   :  { %v1261_v18 = vadd.f32 %v1257_v62, %v1178_v14  ;;  %v1269_v19 = vadd.f32 %v1265_v63, %v1178_v14  ;;  %v1228_v21 = vrot.slane %v1221_v16, 6  ;;  %v1247_v44 = vrot.slane %v1221_v16, 2  ;;  %v1180_v24 = vpop.f32.mrb[19].mxu0  ;;  %v1223_v25 = vpop.f32.mrb[27].mxu1 }
0x13c4   :  { %v1262_v26 = vadd.f32 %v1258_v5, %v1180_v24  ;;  %v1270_v53 = vadd.f32 %v1266_v7, %v1180_v24  ;;  %v1229_v27 = vrot.slane %v1223_v25, 6  ;;  %v1248_v28 = vrot.slane %v1223_v25, 2 }
0x13c5   :  { %v3211_v29 = vadd.f32 %v1269_v19, %v1238_v2  ;;  %v1232_v20 = vadd.f32 %v1228_v21, %v1174_v55  ;;  %v1251_v50 = vadd.f32 %v1247_v44, %v1174_v55  ;;  %v3213_v30 = vadd.f32 %v1261_v18, %v1238_v2 }
0x13c6   :  { %v3215_v31 = vadd.f32 %v1270_v53, %v1242_v49  ;;  %v1233_v17 = vadd.f32 %v1229_v27, %v1176_v52  ;;  %v1252_v22 = vadd.f32 %v1248_v28, %v1176_v52  ;;  %v3217_v32 = vadd.f32 %v1262_v26, %v1242_v49 }
0x13c7   :  { %v3219_v34 = vadd.f32 %v1238_v2, %v1232_v20  ;;  %v3221_v35 = vadd.f32 %v1251_v50, %v1238_v2 }
0x13c8   :  { %v3223_v37 = vadd.f32 %v1252_v22, %v1242_v49  ;;  %v3225_v39 = vadd.f32 %v1242_v49, %v1233_v17 }
0x13d0   :  { %v1347_v38 = vpop.f32.mrb[20].mxu0 }
0x13d1   :  { %v1349_v40 = vpop.f32.mrb[21].mxu0  ;;  %v1354_v43 = vadd.f32 %v1347_v38, %v3219_v34 }
0x13d2   :  { %v1355_v48 = vadd.f32 %v1349_v40, %v3225_v39  ;;  %v1351_v42 = vpop.f32.mrb[22].mxu0 }
0x13d3   :  { %v1352_v45 = vpop.f32.mrb[23].mxu0  ;;  %v2320_v47 = vmul.f32 -1.442695, %v1354_v43 }
0x13d4   :  { %2551 = vtanh.f32 %v1355_v48  ;;  %v2321_v15 = vmul.f32 -1.442695, %v1355_v48 }
0x13d5   :  { %2553 = vpow2.f32 %v2320_v47 }
0x13de   :  { %v2552_v46 = vpop.eup %2551 }
0x13df   :  { %1371 = vrot.lane.b32.xlu0 %v2552_v46, %s2781_s4  ;;  %v2554_v51 = vpop.eup %2553 }
0x13e0   :  { %v1362_v54 = vadd.f32 1.0, %v2554_v51 }
0x13e2   :  { %2555 = vrcp.f32 %v1362_v54 }
0x13ec   :  { %v2556_v4 = vpop.eup %2555 }
0x13ed   :  { %v1369_v11 = vmul.f32 0.0, %v2556_v4 }
0x1451   :  { %v1372_v8 = vpop.permute.xlu0 %1371 }
0x1452   :  { %v1374_v9 = vmul.f32 %v2556_v4, %v1372_v8 }
0x1454   :  { %1376 = vrot.lane.b32.xlu1 %v1374_v9, %s2781_s4 }
0x14c6   :  { %v1377_v3 = vpop.permute.xlu1 %1376 }
0x14c7   :  { %v1379_v12 = vadd.f32 %v1377_v3, %v1369_v11 }
0x14c9   :  { %2557 = vtanh.f32 %v1379_v12  ;;  %v1453_v26 = vrot.slane %v1379_v12, 6 }
0x14ca   :  { %2559 = vpow2.f32 %v2321_v15 }
0x14d3   :  { %v2558_v41 = vpop.eup %2557 }
0x14d4   :  { %1382 = vrot.lane.b32.xlu0 %v2558_v41, %s2781_s4  ;;  %v2560_v13 = vpop.eup %2559 }
0x14d5   :  { %v1363_v58 = vadd.f32 1.0, %v2560_v13 }
0x14d7   :  { %2561 = vrcp.f32 %v1363_v58 }
0x14e1   :  { %v2562_v60 = vpop.eup %2561 }
0x1546   :  { %v1383_v55 = vpop.permute.xlu0 %1382 }
0x1547   :  { %v3232_v61 = vmul.f32 %v2562_v60, %v1383_v55 }
0x1549   :  { %v1386_v62 = vpack.c.bf16 %v3232_v61, %v3232_v61 }
0x154b   :  { %2322 = vmatmul.mubr.msk.bf16.vlgmr.msra.gmra.mrb[28].mxu1 %vm306_vm1, %v1386_v62 }
0x154c   :  { %1567 = vmatpush1.bf16.msra.mxu1 %v3142_v10  ;;  %1598 = vmatprep.mubr.bf16.mxu1 %v2783_v0 }
0x154d   :  { %1568 = vmatprep.subr.bf16.mxu1 %v3147_v23 }
0x1550   :  { %1569 = vmatpush1.bf16.msra.mxu1 %v3155_v33 }
0x1551   :  { %1570 = vmatprep.subr.bf16.mxu1 %v3162_v6 }
0x1554   :  { %1571 = vmatpush1.bf16.msra.mxu1 %v3171_v56 }
0x1555   :  { %1572 = vmatprep.subr.bf16.mxu1 %v3177_v57 }
0x1558   :  { %1573 = vmatpush1.bf16.msra.mxu1 %v3185_v59 }
0x1559   :  { %1734 = vmatprep.subr.bf16.mxu1 %v3116_v36 }
0x161e   :  { %v1424_v63 = vpop.f32.mrb[28].mxu1 }
0x161f   :  { %v1426_v52 = vpop.f32.mrb[29].mxu1  ;;  %v1433_v16 = vrot.slane %v1424_v63, 6 }
0x1620   :  { %v1434_v1 = vrot.slane %v1426_v52, 6  ;;  %v1428_v2 = vpop.f32.mrb[30].mxu1 }
0x1621   :  { %v1429_v5 = vpop.f32.mrb[31].mxu1  ;;  %v1437_v49 = vadd.f32 %v1433_v16, %v3221_v35 }
0x1622   :  { %v1438_v7 = vadd.f32 %v1434_v1, %v3223_v37 }
0x1623   :  { %v2323_v18 = vmul.f32 -1.442695, %v1437_v49 }
0x1624   :  { %2563 = vtanh.f32 %v1438_v7  ;;  %v2324_v50 = vmul.f32 -1.442695, %v1438_v7 }
0x1625   :  { %2565 = vpow2.f32 %v2323_v18 }
0x162e   :  { %v2564_v14 = vpop.eup %2563 }
0x162f   :  { %1457 = vrot.lane.b32.xlu1 %v2564_v14, %s2781_s4  ;;  %v2566_v19 = vpop.eup %2565 }
0x1630   :  { %v1445_v21 = vadd.f32 1.0, %v2566_v19 }
0x1632   :  { %2567 = vrcp.f32 %v1445_v21 }
0x163c   :  { %v2568_v44 = vpop.eup %2567 }
0x163d   :  { %v1455_v53 = vmul.f32 %v2568_v44, %v1453_v26 }
0x16a1   :  { %v1458_v24 = vpop.permute.xlu1 %1457 }
0x16a2   :  { %v1460_v25 = vmul.f32 %v2568_v44, %v1458_v24 }
0x16a4   :  { %1462 = vrot.lane.b32.xlu0 %v1460_v25, %s2781_s4 }
0x1716   :  { %v1463_v27 = vpop.permute.xlu0 %1462 }
0x1717   :  { %v1465_v28 = vadd.f32 %v1463_v27, %v1455_v53 }
0x1719   :  { %2569 = vtanh.f32 %v1465_v28  ;;  %v1541_v60 = vrot.slane %v1465_v28, 6 }
0x171a   :  { %2571 = vpow2.f32 %v2324_v50 }
0x1723   :  { %v2570_v20 = vpop.eup %2569 }
0x1724   :  { %1468 = vrot.lane.b32.xlu1 %v2570_v20, %s2781_s4  ;;  %v2572_v17 = vpop.eup %2571 }
0x1725   :  { %v1446_v22 = vadd.f32 1.0, %v2572_v17 }
0x1727   :  { %2573 = vrcp.f32 %v1446_v22 }
0x1731   :  { %v2574_v38 = vpop.eup %2573 }
0x1796   :  { %v1469_v40 = vpop.permute.xlu1 %1468 }
0x1797   :  { %v3251_v48 = vmul.f32 %v2574_v38, %v1469_v40 }
0x1799   :  { %v1472_v42 = vpack.c.bf16 %v3251_v48, %v3251_v48 }
0x179b   :  { %v1474_v45 = vrot.slane %v1472_v42, 1 }
0x179d   :  { %2325 = vmatmul.mubr.msk.bf16.vlgmr.msra.gmra.mrb[24].mxu0 %vm306_vm1, %v1474_v45 }
0x179e   :  { %1655 = vmatpush1.bf16.msra.mxu0 %v3142_v10  ;;  %1686 = vmatprep.mubr.bf16.mxu0 %v2783_v0 }
0x179f   :  { %1656 = vmatprep.subr.bf16.mxu0 %v3147_v23 }
0x17a2   :  { %1657 = vmatpush1.bf16.msra.mxu0 %v3155_v33 }
0x17a3   :  { %1658 = vmatprep.subr.bf16.mxu0 %v3162_v6 }
0x17a6   :  { %1659 = vmatpush1.bf16.msra.mxu0 %v3171_v56 }
0x17a7   :  { %1660 = vmatprep.subr.bf16.mxu0 %v3177_v57 }
0x17aa   :  { %1661 = vmatpush1.bf16.msra.mxu0 %v3185_v59 }
0x17ab   :  { %1822 = vmatprep.subr.bf16.mxu0 %v3116_v36 }
0x1870   :  { %v1512_v46 = vpop.f32.mrb[24].mxu0 }
0x1871   :  { %v1514_v43 = vpop.f32.mrb[25].mxu0  ;;  %v1521_v9 = vrot.slane %v1512_v46, 4 }
0x1872   :  { %v1522_v47 = vrot.slane %v1514_v43, 4  ;;  %v1516_v51 = vpop.f32.mrb[26].mxu0 }
0x1873   :  { %v1517_v54 = vpop.f32.mrb[27].mxu0  ;;  %v1525_v11 = vadd.f32 %v1521_v9, %v3219_v34 }
0x1874   :  { %v1526_v4 = vadd.f32 %v1522_v47, %v3225_v39 }
0x1875   :  { %v2326_v3 = vmul.f32 -1.442695, %v1525_v11 }
0x1876   :  { %2575 = vtanh.f32 %v1526_v4  ;;  %v2327_v52 = vmul.f32 -1.442695, %v1526_v4 }
0x1877   :  { %2577 = vpow2.f32 %v2326_v3 }
0x1880   :  { %v2576_v8 = vpop.eup %2575 }
0x1881   :  { %1545 = vrot.lane.b32.xlu0 %v2576_v8, %s2781_s4  ;;  %v2578_v12 = vpop.eup %2577 }
0x1882   :  { %v1533_v41 = vadd.f32 1.0, %v2578_v12 }
0x1884   :  { %2579 = vrcp.f32 %v1533_v41 }
0x188e   :  { %v2580_v15 = vpop.eup %2579 }
0x188f   :  { %v1543_v55 = vmul.f32 %v2580_v15, %v1541_v60 }
0x18f3   :  { %v1546_v13 = vpop.permute.xlu0 %1545 }
0x18f4   :  { %v1548_v58 = vmul.f32 %v2580_v15, %v1546_v13 }
0x18f6   :  { %1550 = vrot.lane.b32.xlu1 %v1548_v58, %s2781_s4 }
0x1968   :  { %v1551_v39 = vpop.permute.xlu1 %1550 }
0x1969   :  { %v1553_v62 = vadd.f32 %v1551_v39, %v1543_v55 }
0x196b   :  { %2581 = vtanh.f32 %v1553_v62  ;;  %v1629_v22 = vrot.slane %v1553_v62, 6 }
0x196c   :  { %2583 = vpow2.f32 %v2327_v52 }
0x1975   :  { %v2582_v63 = vpop.eup %2581 }
0x1976   :  { %1556 = vrot.lane.b32.xlu0 %v2582_v63, %s2781_s4  ;;  %v2584_v34 = vpop.eup %2583 }
0x1977   :  { %v1534_v1 = vadd.f32 1.0, %v2584_v34 }
0x1979   :  { %2585 = vrcp.f32 %v1534_v1 }
0x1983   :  { %v2586_v2 = vpop.eup %2585 }
0x19e8   :  { %v1557_v5 = vpop.permute.xlu0 %1556 }
0x19e9   :  { %v3270_v7 = vmul.f32 %v2586_v2, %v1557_v5 }
0x19eb   :  { %v1560_v14 = vpack.c.bf16 %v3270_v7, %v3270_v7 }
0x19ed   :  { %v1562_v16 = vrot.slane %v1560_v14, 2 }
0x19ef   :  { %2328 = vmatmul.mubr.msk.bf16.vlgmr.msra.gmra.mrb[32].mxu1 %vm306_vm1, %v1562_v16 }
0x19f0   :  { %1735 = vmatpush1.bf16.msra.mxu1 %v3142_v10  ;;  %1766 = vmatprep.mubr.bf16.mxu1 %v2783_v0 }
0x19f1   :  { %1736 = vmatprep.subr.bf16.mxu1 %v3147_v23 }
0x19f4   :  { %1737 = vmatpush1.bf16.msra.mxu1 %v3155_v33 }
0x19f5   :  { %1738 = vmatprep.subr.bf16.mxu1 %v3162_v6 }
0x19f8   :  { %1739 = vmatpush1.bf16.msra.mxu1 %v3171_v56 }
0x19f9   :  { %1740 = vmatprep.subr.bf16.mxu1 %v3177_v57 }
0x19fc   :  { %1741 = vmatpush1.bf16.msra.mxu1 %v3185_v59 }
0x19fd   :  { %1910 = vmatprep.subr.bf16.mxu1 %v3116_v36 }
0x1ac2   :  { %v1600_v49 = vpop.f32.mrb[32].mxu1 }
0x1ac3   :  { %v1602_v18 = vpop.f32.mrb[33].mxu1  ;;  %v1609_v26 = vrot.slane %v1600_v49, 2 }
0x1ac4   :  { %v1610_v19 = vrot.slane %v1602_v18, 2  ;;  %v1604_v21 = vpop.f32.mrb[34].mxu1 }
0x1ac5   :  { %v1605_v44 = vpop.f32.mrb[35].mxu1  ;;  %v1613_v53 = vadd.f32 %v1609_v26, %v3221_v35 }
0x1ac6   :  { %v1614_v24 = vadd.f32 %v1610_v19, %v3223_v37 }
0x1ac7   :  { %v2329_v27 = vmul.f32 -1.442695, %v1613_v53 }
0x1ac8   :  { %2587 = vtanh.f32 %v1614_v24  ;;  %v2330_v45 = vmul.f32 -1.442695, %v1614_v24 }
0x1ac9   :  { %2589 = vpow2.f32 %v2329_v27 }
0x1ad2   :  { %v2588_v25 = vpop.eup %2587 }
0x1ad3   :  { %1633 = vrot.lane.b32.xlu1 %v2588_v25, %s2781_s4  ;;  %v2590_v28 = vpop.eup %2589 }
0x1ad4   :  { %v1621_v20 = vadd.f32 1.0, %v2590_v28 }
0x1ad6   :  { %2591 = vrcp.f32 %v1621_v20 }
0x1ae0   :  { %v2592_v36 = vpop.eup %2591 }
0x1ae1   :  { %v1631_v38 = vmul.f32 %v2592_v36, %v1629_v22 }
0x1b45   :  { %v1634_v50 = vpop.permute.xlu1 %1633 }
0x1b46   :  { %v1636_v17 = vmul.f32 %v2592_v36, %v1634_v50 }
0x1b48   :  { %1638 = vrot.lane.b32.xlu0 %v1636_v17, %s2781_s4 }
0x1bba   :  { %v1639_v37 = vpop.permute.xlu0 %1638 }
0x1bbb   :  { %v1641_v40 = vadd.f32 %v1639_v37, %v1631_v38 }
0x1bbd   :  { %2593 = vtanh.f32 %v1641_v40  ;;  %v1711_v63 = vrot.slane %v1641_v40, 6 }
0x1bbe   :  { %2595 = vpow2.f32 %v2330_v45 }
0x1bc7   :  { %v2594_v42 = vpop.eup %2593 }
0x1bc8   :  { %1644 = vrot.lane.b32.xlu1 %v2594_v42, %s2781_s4  ;;  %v2596_v35 = vpop.eup %2595 }
0x1bc9   :  { %v1622_v46 = vadd.f32 1.0, %v2596_v35 }
0x1bcb   :  { %2597 = vrcp.f32 %v1622_v46 }
0x1bd5   :  { %v2598_v43 = vpop.eup %2597 }
0x1c3a   :  { %v1645_v47 = vpop.permute.xlu1 %1644 }
0x1c3b   :  { %v3289_v51 = vmul.f32 %v2598_v43, %v1645_v47 }
0x1c3d   :  { %v1648_v54 = vpack.c.bf16 %v3289_v51, %v3289_v51 }
0x1c3f   :  { %v1650_v4 = vrot.slane %v1648_v54, 3 }
0x1c41   :  { %2331 = vmatmul.mubr.msk.bf16.vlgmr.msra.gmra.mrb[28].mxu0 %vm306_vm1, %v1650_v4 }
0x1c42   :  { %1823 = vmatpush1.bf16.msra.mxu0 %v3142_v10  ;;  %1854 = vmatprep.mubr.bf16.mxu0 %v2783_v0 }
0x1c43   :  { %1824 = vmatprep.subr.bf16.mxu0 %v3147_v23 }
0x1c46   :  { %1825 = vmatpush1.bf16.msra.mxu0 %v3155_v33 }
0x1c47   :  { %1826 = vmatprep.subr.bf16.mxu0 %v3162_v6 }
0x1c4a   :  { %1827 = vmatpush1.bf16.msra.mxu0 %v3171_v56 }
0x1c4b   :  { %1828 = vmatprep.subr.bf16.mxu0 %v3177_v57 }
0x1c4e   :  { %1829 = vmatpush1.bf16.msra.mxu0 %v3185_v59 }
0x1d14   :  { %v1688_v8 = vpop.f32.mrb[28].mxu0 }
0x1d15   :  { %v1690_v9 = vpop.f32.mrb[29].mxu0  ;;  %v1695_v15 = vadd.f32 %v1688_v8, %v3213_v30 }
0x1d16   :  { %v1696_v11 = vadd.f32 %v1690_v9, %v3217_v32  ;;  %v1692_v3 = vpop.f32.mrb[30].mxu0 }
0x1d17   :  { %v1693_v12 = vpop.f32.mrb[31].mxu0  ;;  %v2332_v13 = vmul.f32 -1.442695, %v1695_v15 }
0x1d18   :  { %2599 = vtanh.f32 %v1696_v11  ;;  %v2333_v5 = vmul.f32 -1.442695, %v1696_v11 }
0x1d19   :  { %2601 = vpow2.f32 %v2332_v13 }
0x1d22   :  { %v2600_v41 = vpop.eup %2599 }
0x1d23   :  { %1715 = vrot.lane.b32.xlu0 %v2600_v41, %s2781_s4  ;;  %v2602_v58 = vpop.eup %2601 }
0x1d24   :  { %v1703_v60 = vadd.f32 1.0, %v2602_v58 }
0x1d26   :  { %2603 = vrcp.f32 %v1703_v60 }
0x1d30   :  { %v2604_v55 = vpop.eup %2603 }
0x1d31   :  { %v1713_v52 = vmul.f32 %v2604_v55, %v1711_v63 }
0x1d95   :  { %v1716_v39 = vpop.permute.xlu0 %1715 }
0x1d96   :  { %v1718_v62 = vmul.f32 %v2604_v55, %v1716_v39 }
0x1d98   :  { %1720 = vrot.lane.b32.xlu1 %v1718_v62, %s2781_s4 }
0x1e0a   :  { %v1721_v34 = vpop.permute.xlu1 %1720 }
0x1e0b   :  { %v1723_v1 = vadd.f32 %v1721_v34, %v1713_v52 }
0x1e0d   :  { %2605 = vtanh.f32 %v1723_v1  ;;  %v1797_v36 = vrot.slane %v1723_v1, 6 }
0x1e0e   :  { %2607 = vpow2.f32 %v2333_v5 }
0x1e17   :  { %v2606_v2 = vpop.eup %2605 }
0x1e18   :  { %1726 = vrot.lane.b32.xlu0 %v2606_v2, %s2781_s4  ;;  %v2608_v14 = vpop.eup %2607 }
0x1e19   :  { %v1704_v16 = vadd.f32 1.0, %v2608_v14 }
0x1e1b   :  { %2609 = vrcp.f32 %v1704_v16 }
0x1e25   :  { %v2610_v49 = vpop.eup %2609 }
0x1e8a   :  { %v1727_v18 = vpop.permute.xlu0 %1726 }
0x1e8b   :  { %v3307_v19 = vmul.f32 %v2610_v49, %v1727_v18 }
0x1e8d   :  { %v1730_v21 = vpack.c.bf16 %v3307_v19, %v3307_v19 }
0x1e8f   :  { %2334 = vmatmul.mubr.msk.bf16.vlgmr.msra.gmra.mrb[36].mxu1 %vm306_vm1, %v1730_v21 }
0x1e90   :  { %1911 = vmatpush1.bf16.msra.mxu1 %v3142_v10  ;;  %1942 = vmatprep.mubr.bf16.mxu1 %v2783_v0 }
0x1e91   :  { %1912 = vmatprep.subr.bf16.mxu1 %v3147_v23 }
0x1e94   :  { %1913 = vmatpush1.bf16.msra.mxu1 %v3155_v33 }
0x1e95   :  { %1914 = vmatprep.subr.bf16.mxu1 %v3162_v6 }
0x1e98   :  { %1915 = vmatpush1.bf16.msra.mxu1 %v3171_v56 }
0x1e99   :  { %1916 = vmatprep.subr.bf16.mxu1 %v3177_v57 }
0x1e9c   :  { %1917 = vmatpush1.bf16.msra.mxu1 %v3185_v59 }
0x1f62   :  { %v1768_v44 = vpop.f32.mrb[36].mxu1 }
0x1f63   :  { %v1770_v24 = vpop.f32.mrb[37].mxu1  ;;  %v1777_v23 = vrot.slane %v1768_v44, 6 }
0x1f64   :  { %v1778_v25 = vrot.slane %v1770_v24, 6  ;;  %v1772_v26 = vpop.f32.mrb[38].mxu1 }
0x1f65   :  { %v1773_v53 = vpop.f32.mrb[39].mxu1  ;;  %v1781_v33 = vadd.f32 %v1777_v23, %v3211_v29 }
0x1f66   :  { %v1782_v10 = vadd.f32 %v1778_v25, %v3215_v31 }
0x1f67   :  { %v2335_v6 = vmul.f32 -1.442695, %v1781_v33 }
0x1f68   :  { %2611 = vtanh.f32 %v1782_v10  ;;  %v2336_v37 = vmul.f32 -1.442695, %v1782_v10 }
0x1f69   :  { %2613 = vpow2.f32 %v2335_v6 }
0x1f72   :  { %v2612_v27 = vpop.eup %2611 }
0x1f73   :  { %1801 = vrot.lane.b32.xlu1 %v2612_v27, %s2781_s4  ;;  %v2614_v56 = vpop.eup %2613 }
0x1f74   :  { %v1789_v57 = vadd.f32 1.0, %v2614_v56 }
0x1f76   :  { %2615 = vrcp.f32 %v1789_v57 }
0x1f80   :  { %v2616_v59 = vpop.eup %2615 }
0x1f81   :  { %v1799_v50 = vmul.f32 %v2616_v59, %v1797_v36  ;;  %v2451_v36 = vld [vmem:[#allocation8] sm:$0xff]  }
0x1fe5   :  { %v1802_v28 = vpop.permute.xlu1 %1801 }
0x1fe6   :  { %v1804_v20 = vmul.f32 %v2616_v59, %v1802_v28 }
0x1fe8   :  { %1806 = vrot.lane.b32.xlu0 %v1804_v20, %s2781_s4 }
0x205a   :  { %v1807_v17 = vpop.permute.xlu0 %1806 }
0x205b   :  { %v1809_v22 = vadd.f32 %v1807_v17, %v1799_v50  ;;  %v2784_v50 = vmov 0.0  }
0x205c   :  { %2354 = vmatprep.subr.bf16.mxu0 %v2784_v50 }
0x205d   :  { %2617 = vtanh.f32 %v1809_v22  ;;  %v1885_v63 = vrot.slane %v1809_v22, 6 }
0x205e   :  { %2619 = vpow2.f32 %v2336_v37  ;;  %v2453_v37 = vld [vmem:[#allocation8 + $0x10] sm:$0xff]  }
0x2067   :  { %v2618_v38 = vpop.eup %2617 }
0x2068   :  { %1812 = vrot.lane.b32.xlu1 %v2618_v38, %s2781_s4  ;;  %v2620_v40 = vpop.eup %2619 }
0x2069   :  { %v1790_v42 = vadd.f32 1.0, %v2620_v40  ;;  %v2454_v40 = vld [vmem:[#allocation8 + $0x18] sm:$0xff]  }
0x206b   :  { %2621 = vrcp.f32 %v1790_v42 }
0x2075   :  { %v2622_v45 = vpop.eup %2621 }
0x20da   :  { %v1813_v35 = vpop.permute.xlu1 %1812 }
0x20db   :  { %v3325_v46 = vmul.f32 %v2622_v45, %v1813_v35 }
0x20dd   :  { %v1816_v43 = vpack.c.bf16 %v3325_v46, %v3325_v46 }
0x20df   :  { %v1818_v47 = vrot.slane %v1816_v43, 1 }
0x20e1   :  { %2337 = vmatmul.mubr.msk.bf16.vlgmr.msra.gmra.mrb[32].mxu0 %vm306_vm1, %v1818_v47 }
0x20e2   :  { %2355 = vmatpush3.bf16.msra.mxu0 %v2451_v36  ;;  %2362 = vmatprep.mubr.msk.bf16.mxu0 %vm2785_vm6, %v2784_v50 }
0x20e3   :  { %2356 = vmatprep.subr.bf16.mxu0 %v2784_v50 }
0x21b4   :  { %v1856_v54 = vpop.f32.mrb[32].mxu0 }
0x21b5   :  { %v1858_v4 = vpop.f32.mrb[33].mxu0  ;;  %v1865_v41 = vrot.slane %v1856_v54, 4 }
0x21b6   :  { %v1866_v8 = vrot.slane %v1858_v4, 4  ;;  %v1860_v9 = vpop.f32.mrb[34].mxu0  ;;  %v2013_v4 = vrot.slane %v3270_v7, 2 }
0x21b7   :  { %v1861_v11 = vpop.f32.mrb[35].mxu0  ;;  %v1869_v15 = vadd.f32 %v1865_v41, %v3213_v30  ;;  %v2009_v41 = vrot.slane %v3289_v51, 6 }
0x21b8   :  { %v1870_v3 = vadd.f32 %v1866_v8, %v3217_v32  ;;  %v2021_v11 = vrot.slane %v3232_v61, 2 }
0x21b9   :  { %v2338_v13 = vmul.f32 -1.442695, %v1869_v15  ;;  %v2005_v15 = vrot.slane %v3307_v19, 2 }
0x21ba   :  { %2623 = vtanh.f32 %v1870_v3  ;;  %v2339_v2 = vmul.f32 -1.442695, %v1870_v3  ;;  %v2017_v3 = vrot.slane %v3251_v48, 6 }
0x21bb   :  { %2625 = vpow2.f32 %v2338_v13  ;;  %v3354_v13 = vsel %vm992_vm2, %v3325_v46, %v2013_v4  ;;  %v2790_v4 = vmov 5  }
0x21c4   :  { %v2624_v12 = vpop.eup %2623 }
0x21c5   :  { %1889 = vrot.lane.b32.xlu0 %v2624_v12, %s2781_s4  ;;  %v2626_v58 = vpop.eup %2625  ;;  %v2001_v12 = vrot.slane %v3325_v46, 6 }
0x21c6   :  { %v1877_v60 = vadd.f32 1.0, %v2626_v58 }
0x21c8   :  { %2627 = vrcp.f32 %v1877_v60 }
0x21d2   :  { %v2628_v55 = vpop.eup %2627 }
0x21d3   :  { %v1887_v52 = vmul.f32 %v2628_v55, %v1885_v63  ;;  %v3377_v63 = vsel %vm992_vm2, %v3270_v7, %v2001_v12 }
0x2237   :  { %v1890_v39 = vpop.permute.xlu0 %1889 }
0x2238   :  { %v1892_v62 = vmul.f32 %v2628_v55, %v1890_v39  ;;  %v3362_v55 = vsel %vm992_vm2, %v3307_v19, %v2009_v41 }
0x2239   :  { %v2027_v19 = vsel %vm1022_vm3, %v3362_v55, %v3354_v13 }
0x223a   :  { %1894 = vrot.lane.b32.xlu1 %v1892_v62, %s2781_s4 }
0x22ac   :  { %v1895_v32 = vpop.permute.xlu1 %1894 }
0x22ad   :  { %v1897_v34 = vadd.f32 %v1895_v32, %v1887_v52  ;;  %v3387_v52 = vsel %vm992_vm2, %v3289_v51, %v2005_v15 }
0x22af   :  { %2629 = vtanh.f32 %v1897_v34  ;;  %v1973_v17 = vrot.slane %v1897_v34, 6 }
0x22b0   :  { %2631 = vpow2.f32 %v2339_v2 }
0x22b9   :  { %v2630_v1 = vpop.eup %2629 }
0x22ba   :  { %1900 = vrot.lane.b32.xlu0 %v2630_v1, %s2781_s4  ;;  %v2632_v30 = vpop.eup %2631 }
0x22bb   :  { %v1878_v5 = vadd.f32 1.0, %v2632_v30 }
0x22bd   :  { %2633 = vrcp.f32 %v1878_v5 }
0x22c7   :  { %v2634_v14 = vpop.eup %2633 }
0x232c   :  { %v1901_v16 = vpop.permute.xlu0 %1900 }
0x232d   :  { %v3335_v49 = vmul.f32 %v2634_v14, %v1901_v16  ;;  %v2348_v14 = vld [vmem:[%s3432_s8] ss:$0 sm:$0xff]  ;;  %s2793_s8 = smov [#allocation10]  }
0x232e   :  { %s2245_s15 = sshll.u32 %s2793_s8, 4  ;;  %s2246_s15 = int_to_ptr.vmem [resolvable:$true] %s2245_s15 }
0x232f   :  { %v1904_v18 = vpack.c.bf16 %v3335_v49, %v3335_v49  ;;  %v1997_v8 = vrot.slane %v3335_v49, 2  ;;  %v3358_v60 = vsel %vm992_vm2, %v3335_v49, %v2017_v3  ;;  %p2748_p5 = scmp.lt.s32.totalorder %s2246_s15, %s2246_s15 }
0x2331   :  { %v1906_v21 = vrot.slane %v1904_v18, 2  ;;  %v3366_v39 = vsel %vm992_vm2, %v3251_v48, %v1997_v8  ;;  %v2791_v8 = vmov 4  }
0x2333   :  { %2340 = vmatmul.mubr.msk.bf16.vlgmr.msra.gmra.mrb[40].mxu1 %vm306_vm1, %v1906_v21 }
0x2406   :  { %v1944_v44 = vpop.f32.mrb[40].mxu1 }
0x2407   :  { %v1946_v24 = vpop.f32.mrb[41].mxu1  ;;  %v1953_v23 = vrot.slane %v1944_v44, 2 }
0x2408   :  { %v1954_v25 = vrot.slane %v1946_v24, 2  ;;  %v1948_v26 = vpop.f32.mrb[42].mxu1 }
0x2409   :  { %v1949_v53 = vpop.f32.mrb[43].mxu1  ;;  %v1957_v33 = vadd.f32 %v1953_v23, %v3211_v29 }
0x240a   :  { %v1958_v10 = vadd.f32 %v1954_v25, %v3215_v31  ;;  %v2452_v31 = vld [vmem:[#allocation8 + $0x8] sm:$0xff]  }
0x240b   :  { %v2341_v6 = vmul.f32 -1.442695, %v1957_v33  ;;  %2357 = vmatpush3.bf16.msra.mxu0 %v2452_v31 }
0x240c   :  { %2635 = vtanh.f32 %v1958_v10  ;;  %2358 = vmatprep.subr.bf16.mxu0 %v2784_v50  ;;  %v2342_v45 = vmul.f32 -1.442695, %v1958_v10 }
0x240d   :  { %2637 = vpow2.f32 %v2341_v6 }
0x240f   :  { %2359 = vmatpush3.bf16.msra.mxu0 %v2453_v37 }
0x2410   :  { %2360 = vmatprep.subr.bf16.mxu0 %v2784_v50 }
0x2413   :  { %2361 = vmatpush3.bf16.msra.mxu0 %v2454_v40  ;;  %v2786_v40 = vmov 2  }
0x2414   :  { %2388 = vset.pattern.permute.xlu0 %v2786_v40 }
0x2416   :  { %v2636_v27 = vpop.eup %2635 }
0x2417   :  { %1977 = vrot.lane.b32.xlu1 %v2636_v27, %s2781_s4  ;;  %v2638_v56 = vpop.eup %2637 }
0x2418   :  { %v1965_v57 = vadd.f32 1.0, %v2638_v56 }
0x241a   :  { %2639 = vrcp.f32 %v1965_v57 }
0x2424   :  { %v2640_v59 = vpop.eup %2639 }
0x2425   :  { %v1975_v29 = vmul.f32 %v2640_v59, %v1973_v17 }
0x2489   :  { %v1978_v28 = vpop.permute.xlu1 %1977 }
0x248a   :  { %v1980_v20 = vmul.f32 %v2640_v59, %v1978_v28 }
0x248c   :  { %1982 = vrot.lane.b32.xlu0 %v1980_v20, %s2781_s4 }
0x24fe   :  { %v1983_v22 = vpop.permute.xlu0 %1982 }
0x24ff   :  { %v1985_v38 = vadd.f32 %v1983_v22, %v1975_v29 }
0x2501   :  { %2641 = vtanh.f32 %v1985_v38 }
0x2502   :  { %2643 = vpow2.f32 %v2342_v45 }
0x250b   :  { %v2642_v42 = vpop.eup %2641 }
0x250c   :  { %1988 = vrot.lane.b32.xlu1 %v2642_v42, %s2781_s4  ;;  %v2644_v35 = vpop.eup %2643  ;;  %v2787_v42 = vmov 1   ;;  %s2743_s4 = scalar_lea.vmem %s2246_s15, 32 }
0x250d   :  { %v1966_v43 = vadd.f32 1.0, %v2644_v35  ;;  %2387 = vset.pattern.permute.xlu1 %v2787_v42  ;;  %p2744_p4 = scmp.ne.s32.totalorder %s2246_s15, %s2743_s4  ;;  %p2749_p6 = scmp.lt.s32.totalorder %s2743_s4, %s2743_s4 }
0x250f   :  { %2645 = vrcp.f32 %v1966_v43  ;;  %p2750_p7 = por %p2749_p6, %p2748_p5 }
0x2511   :  { %p2751_p8 = pnand %p2750_p7, %p2744_p4 }
0x2519   :  { %v2646_v47 = vpop.eup %2645 }
0x257e   :  { %v1989_v54 = vpop.permute.xlu1 %1988 }
0x257f   :  { %v1991_v9 = vmul.f32 %v2646_v47, %v1989_v54  ;;  %v2788_v47 = vmov 7   ;;  %v2789_v54 = vmov 3  }
0x2581   :  { %v1993_v58 = vrot.slane %v1991_v9, 6  ;;  %v3373_v46 = vsel %vm992_vm2, %v1991_v9, %v2021_v11  ;;  %v2792_v9 = vmov 6  }
0x2583   :  { %v3370_v62 = vsel %vm992_vm2, %v3232_v61, %v1993_v58  ;;  %v2028_v61 = vsel %vm1024_vm4, %v2027_v19, %v3358_v60 }
0x2584   :  { %v2024_v48 = vsel %vm1022_vm3, %v3370_v62, %v3366_v39  ;;  %v2029_v34 = vsel %vm1026_vm5, %v2028_v61, %v3373_v46 }
0x2585   :  { %v2025_v32 = vsel %vm1024_vm4, %v2024_v48, %v3377_v63 }
0x2586   :  { %v2026_v7 = vsel %vm1026_vm5, %v2025_v32, %v3387_v52 }
0x2587   :  { %v2030_v1 = vpack.c.bf16 %v2029_v34, %v2026_v7 }
0x2589   :  { %2363 = vmatmul.mubr.msk.bf16.vlgmr.msra.gmra.mrb[36].mxu0 %vm306_vm1, %v2030_v1 }
0x265c   :  { %v2100_v2 = vpop.f32.mrb[36].mxu0 }
0x265d   :  { %2647 = vtanh.f32 %v2100_v2  ;;  %v2364_v30 = vpop.f32.mrb[37].mxu0 }
0x265e   :  { %v2103_v51 = vpop.f32.mrb[38].mxu0 }
0x265f   :  { %2649 = vtanh.f32 %v2103_v51  ;;  %v2365_v5 = vpop.f32.mrb[39].mxu0 }
0x2667   :  { %v2648_v16 = vpop.eup %2647 }
0x2668   :  { %v2116_v49 = vmul.f32 %v2648_v16, %v2348_v14 }
0x2669   :  { %v2650_v18 = vpop.eup %2649 }
0x266a   :  { %v2118_v21 = vsel %vm306_vm1, %v2116_v49, 0.0  ;;  %v2117_v44 = vmul.f32 %v2650_v18, %v2348_v14 }
0x266b   :  { %2119 = vadd.xlane.f32.xlu0 %v2118_v21 }
0x266c   :  { %v2121_v24 = vsel %vm306_vm1, %v2117_v44, 0.0 }
0x266d   :  { %2122 = vadd.xlane.f32.xlu1 %v2121_v24 }
0x26f8   :  { %v2120_v25 = vpop.xlane.xlu0 %2119 }
0x26f9   :  { %v2125_v26 = vrot.slane %v2120_v25, 2  ;;  %v2127_v53 = vrot.slane %v2120_v25, 4  ;;  %v2129_v27 = vrot.slane %v2120_v25, 6 }
0x26fa   :  { %v2123_v10 = vpop.xlane.xlu1 %2122 }
0x26fb   :  { %v2139_v23 = vsel %vm2138_vm7, %v2120_v25, %v2125_v26  ;;  %v2132_v56 = vrot.slane %v2123_v10, 2  ;;  %v2134_v57 = vrot.slane %v2123_v10, 4  ;;  %v2136_v28 = vrot.slane %v2123_v10, 6 }
0x26fc   :  { %v2141_v33 = vsel %vm2140_vm8, %v2139_v23, %v2127_v53 }
0x26fd   :  { %v2143_v6 = vsel %vm2142_vm9, %v2141_v33, %v2129_v27 }
0x26fe   :  { %v2145_v59 = vsel %vm2144_vm10, %v2143_v6, %v2123_v10 }
0x26ff   :  { %v2147_v20 = vsel %vm2146_vm11, %v2145_v59, %v2132_v56 }
0x2700   :  { %v2149_v36 = vsel %vm2148_vm12, %v2147_v20, %v2134_v57 }
0x2701   :  { %v2151_v50 = vsel %vm2150_vm13, %v2149_v36, %v2136_v28 }
0x2702   :  { %v2153_v31 = vsel %vm2152_vm14, %v2151_v50, -inf }
0x2703   :  { %2154 = vmax.xlane.f32.xlu0 %v2153_v31 }
0x2790   :  { %v2155_v17 = vpop.xlane.xlu0 %2154 }
0x2791   :  { %v2156_v29 = vsub.f32 %v2151_v50, %v2155_v17 }
0x2793   :  { %v2157_v22 = vmul.f32 1.442695, %v2156_v29 }
0x2795   :  { %2651 = vpow2.f32 %v2157_v22 }
0x279f   :  { %v2652_v38 = vpop.eup %2651 }
0x27a0   :  { %v2159_v37 = vsel %vm2152_vm14, %v2652_v38, 0.0 }
0x27a1   :  { %2160 = vadd.xlane.f32.xlu0 %v2159_v37 }
0x282e   :  { %v2161_v45 = vpop.xlane.xlu0 %2160 }
0x282f   :  { %2653 = vrcp.f32 %v2161_v45 }
0x2839   :  { %v2654_v35 = vpop.eup %2653 }
0x283a   :  { %v2163_v43 = vmul.f32 %v2654_v35, %v2652_v38 }
0x283c   :  { %2182 = vperm.xlu0 %2388, %v2163_v43   ;;  %2172 = vperm.xlu1 %2387, %v2163_v43  }
0x2840   :  { %2389 = vset.pattern.permute.xlu1 %v2783_v0  ;;  %2395 = vset.pattern.permute.xlu0 %v2788_v47 }
0x2841   :  { %2166 = vperm.xlu1 %2389, %v2163_v43  }
0x2845   :  { %2390 = vset.pattern.permute.xlu1 %v2789_v54 }
0x2846   :  { %2192 = vperm.xlu1 %2390, %v2163_v43  }
0x284a   :  { %2391 = vset.pattern.permute.xlu1 %v2790_v4 }
0x284b   :  { %2208 = vperm.xlu1 %2391, %v2163_v43  }
0x284f   :  { %2392 = vset.pattern.permute.xlu1 %v2791_v8 }
0x2850   :  { %2202 = vperm.xlu1 %2392, %v2163_v43  }
0x2854   :  { %2393 = vset.pattern.permute.xlu1 %v2792_v9 }
0x2855   :  { %2218 = vperm.xlu1 %2393, %v2163_v43  }
0x2859   :  { %2394 = vset.pattern.permute.xlu1 %v2788_v47 }
0x285a   :  { %2228 = vperm.xlu1 %2394, %v2163_v43  }
0x28bb   :  { %v2173_v11 = vpop.permute.xlu1 %2172  ;;  %v2183_v41 = vpop.permute.xlu0 %2182 }
0x28bc   :  { %v2174_v0 = vrot.slane %v2173_v11, 6  ;;  %v2184_v58 = vrot.slane %v2183_v41, 4 }
0x28be   :  { %v2176_v15 = vmul.f32 %v2174_v0, %v3366_v39  ;;  %v2186_v7 = vmul.f32 %v2184_v58, %v3377_v63 }
0x28c0   :  { %v2167_v3 = vpop.permute.xlu1 %2166  ;;  %v2178_v61 = vrot.slane %v2176_v15, 2  ;;  %v2188_v30 = vrot.slane %v2186_v7, 4 }
0x28c1   :  { %v2169_v32 = vmul.f32 %v2167_v3, %v3370_v62 }
0x28c3   :  { %v2180_v2 = vadd.f32 %v2178_v61, %v2169_v32 }
0x28c5   :  { %v2193_v12 = vpop.permute.xlu1 %2192  ;;  %v2190_v14 = vadd.f32 %v2188_v30, %v2180_v2 }
0x28c6   :  { %v2194_v19 = vrot.slane %v2193_v12, 2 }
0x28c8   :  { %v2196_v34 = vmul.f32 %v2194_v19, %v3387_v52 }
0x28ca   :  { %v2209_v48 = vpop.permute.xlu1 %2208  ;;  %v2198_v51 = vrot.slane %v2196_v34, 6 }
0x28cb   :  { %v2210_v5 = vrot.slane %v2209_v48, 6 }
0x28cc   :  { %v2200_v21 = vadd.f32 %v2198_v51, %v2190_v14 }
0x28cd   :  { %v2212_v18 = vmul.f32 %v2210_v5, %v3354_v13 }
0x28cf   :  { %v2203_v1 = vpop.permute.xlu1 %2202  ;;  %v2214_v63 = vrot.slane %v2212_v18, 2 }
0x28d0   :  { %v2205_v16 = vmul.f32 %v2203_v1, %v3362_v55 }
0x28d2   :  { %v2206_v62 = vadd.f32 %v2205_v16, %v2200_v21 }
0x28d4   :  { %v2219_v49 = vpop.permute.xlu1 %2218  ;;  %v2216_v26 = vadd.f32 %v2214_v63, %v2206_v62 }
0x28d5   :  { %v2220_v39 = vrot.slane %v2219_v49, 4 }
0x28d7   :  { %v2222_v44 = vmul.f32 %v2220_v39, %v3358_v60 }
0x28d9   :  { %v2229_v24 = vpop.permute.xlu1 %2228  ;;  %v2224_v25 = vrot.slane %v2222_v44, 4 }
0x28da   :  { %v2230_v52 = vrot.slane %v2229_v24, 2 }
0x28db   :  { %v2226_v10 = vadd.f32 %v2224_v25, %v2216_v26 }
0x28dc   :  { %v2232_v53 = vmul.f32 %v2230_v52, %v3373_v46 }
0x28de   :  { %v2234_v27 = vrot.slane %v2232_v53, 6 }
0x28e0   :  { %v2236_v55 = vadd.f32 %v2234_v27, %v2226_v10 }
0x28e2   :  { %2238 = vst.msk [vmem:[#allocation10] sm:$0x3] %vm2237_vm15, %v2236_v55 }
0x28e3   :  { %2754 = shalt.err (!%p2751_p8)
}
0x28e4   :  { %s2755_s16 = scalar_lea.hbm %s3433_s9, 32 }
0x28e5   :  { %p2756_p9 = scmp.ne.s32.totalorder %s3433_s9, %s2755_s16  ;;  %p2759_p10 = scmp.lt.u32.totalorder %s2755_s16, %s3433_s9 }
0x28e7   :  { %p2761_p11 = pnand %p2759_p10, %p2756_p9 }
0x28e9   :  { %2764 = shalt.err (!%p2761_p11)
}
0x28ea   :  { %2248 = dma.vmem_to_hbm [thread:$0]  %s2246_s15, 32, %s3433_s9, [#allocation4]  }
0x28eb   :  { %2771 = dma.done.wait [#allocation4], 32  }
0x28ec   :  { %2772 = vsyncadd [#allocation4], 4294967264 }
0x28ed   :  { %2252 = vsyncpa [#allocation3], 1 }
0x28ee   :  { %2253 = vsyncpa [#allocation6], 1 }
0x28ef   :  { %2254 = vsyncpa [#allocation9], 1 }
0x28f0   :  { %2255 = vsyncpa [#allocation4], 1 }

</bundles_post_ra>
